<compile_context>
chip_gen: v7x
topology: tpu7x:2x2x1
jax: 0.10.0
libtpu: 0.0.40
codegen_flags: <defaults>
</compile_context>

<pallas_src>
import jax
import jax.numpy as jnp
from jax.experimental import pallas as pl
from jax.experimental.pallas import tpu as pltpu

_MIB = 1024 * 1024


def _round_up(x, m):
    return ((x + m - 1) // m) * m


def _make_attention_kernel(L, cL, tB, E2, Dd):
    """Builds the kernel for static tile sizes: L (doc len), cL (L-chunk), tB (batch
    tile), E2 (encoder feature dim), Dd (decoder hidden dim)."""
    n_chunks = L // cL

    def kernel(hidden_ref, enc_ref, mask_ref, wh_ref, we_ref, b_ref, v_ref,
               out_ref, scores_ref):
        # hidden_ref: [tB, Dd] f32      enc_ref: [L, tB, E2] compute dtype (bf16/f32)
        # mask_ref:   [tB, L]  int32    wh_ref:  [Dd, Dd] f32   we_ref: [E2, Dd]
        # b_ref/v_ref:[1, Dd]  f32      out_ref: [tB, L] f32
        # scores_ref: [L, tB]  f32 VMEM scratch (scores accumulated in [L, tB] layout)

        # --- hidden projection + bias: exactly once per batch tile (tiny, f32) -------
        h_proj = jnp.dot(hidden_ref[...], wh_ref[...],
                         preferred_element_type=jnp.float32) + b_ref[...]   # [tB, Dd]
        we = we_ref[...]                       # hoisted out of the chunk loop
        v_row = v_ref[...][None, :, :]         # [1, 1, Dd]

        # --- enc projection, chunked over L so f32 temporaries stay bounded ----------
        def chunk_body(c, carry):
            l0 = c * cL
            if not isinstance(l0, int):
                l0 = pl.multiple_of(l0, cL)
            enc_c = enc_ref[pl.ds(l0, cL), :, :]                        # [cL, tB, E2]
            # One wide MXU matmul over the flattened (cL*tB) rows.
            e_proj = jnp.dot(enc_c.reshape(cL * tB, E2), we,
                             preferred_element_type=jnp.float32)        # [cL*tB, Dd]
            energy = jnp.tanh(e_proj.reshape(cL, tB, Dd)
                              + h_proj[None, :, :])                     # [cL, tB, Dd]
            # v reduction: VPU mul + XLU lane reduce (~1/E2 of the main matmul).
            # TODO(synk): if a bundle dump shows the XLU slot binding, move this onto
            # the MXU as (cL*tB, Dd) @ (Dd, 128)-padded-v instead.
            sc = jnp.sum(energy * v_row, axis=-1)                       # [cL, tB]
            scores_ref[pl.ds(l0, cL), :] = sc
            return carry

        if n_chunks == 1:
            chunk_body(0, 0)
        else:
            jax.lax.fori_loop(0, n_chunks, chunk_body, 0, unroll=n_chunks <= 8)

        # --- mask + numerically stable softmax over doc_len (f32 on VPU/EUP) ---------
        scores = scores_ref[...].T                                      # [tB, L]
        scores = jnp.where(mask_ref[...] != 0, scores, jnp.float32(-1.0e10))
        scores = scores - jnp.max(scores, axis=-1, keepdims=True)
        num = jnp.exp(scores)
        denom = jnp.sum(num, axis=-1, keepdims=True)
        # approx reciprocal goes to the EUP slot; rows sum to 1 within ~1e-3 relative.
        out_ref[...] = num * pl.reciprocal(denom, approx=True)

    return kernel


def _device_vmem_plan():
    """Generation-specific VMEM budgeting. v5e/v6e: 128 MiB physical VMEM, 1 TC (raise
    the scoped limit, let blocks grow). v7x: 64 MiB physical, 2 TCs (smaller per-step
    budget, cap block_b at B/2 so the grid splits across both cores)."""
    try:
        kind = jax.devices()[0].device_kind.lower()
    except Exception:  # pragma: no cover — defensive
        kind = ""
    if "v7" in kind or "7x" in kind:
        return dict(vmem_limit_bytes=48 * _MIB, step_budget=24 * _MIB, force_split=True)
    if "v6" in kind:
        return dict(vmem_limit_bytes=96 * _MIB, step_budget=48 * _MIB, force_split=False)
    if "v5 lite" in kind or "v5e" in kind or "v5lite" in kind:
        return dict(vmem_limit_bytes=96 * _MIB, step_budget=48 * _MIB, force_split=False)
    # Unknown generation: stay under the smallest default scoped-VMEM limit and keep
    # the grid splittable in case there are multiple cores.
    return dict(vmem_limit_bytes=None, step_budget=12 * _MIB, force_split=True)


def _pick_chunk_len(L, d, max_chunk_rows):
    """Largest L-chunk (divisor of L, sublane-aligned: multiple of 8 or == L) whose
    flattened row count cL*d stays under the cap — bounds f32 temporaries w.r.t. L."""
    cands = [c for c in range(1, L + 1) if L % c == 0 and (c % 8 == 0 or c == L)]
    fitting = [c for c in cands if c * d <= max_chunk_rows]
    return max(fitting) if fitting else min(cands)


def _step_vmem_bytes(d, L, cL, E2, Dd, enc_itemsize):
    """Per-grid-step VMEM footprint with lane(128)/sublane tile rounding: pipelined
    blocks double-buffered, resident weights, scores scratch, f32 chunk temporaries."""
    lane = 128
    sub = 16 if enc_itemsize == 2 else 8
    enc_blk = L * _round_up(d, sub) * _round_up(E2, lane) * enc_itemsize
    hid_blk = _round_up(d, 8) * _round_up(Dd, lane) * 4
    msk_blk = _round_up(d, 8) * _round_up(L, lane) * 4
    out_blk = _round_up(d, 8) * _round_up(L, lane) * 4
    w_blk = (_round_up(Dd, 8) * _round_up(Dd, lane) * 4
             + _round_up(E2, sub) * _round_up(Dd, lane) * enc_itemsize
             + 2 * 8 * _round_up(Dd, lane) * 4)
    scores_scratch = _round_up(L, 8) * _round_up(d, lane) * 4
    chunk_tmp = 3 * cL * _round_up(d, 8) * _round_up(Dd, lane) * 4   # e_proj/energy/prod
    return (2 * (enc_blk + hid_blk + msk_blk + out_blk + w_blk)
            + scores_scratch + chunk_tmp)


def _pick_block_b(B, L, E2, Dd, enc_itemsize, *, step_budget, force_split,
                  max_chunk_rows):
    """Largest batch tile whose FULL per-step VMEM footprint fits the budget (largest
    first also maximizes the strided enc DMA run length = block_b*E2*itemsize)."""
    cands = sorted({d for d in range(1, B + 1)
                    if B % d == 0 and (d % 16 == 0 or d == B)}, reverse=True)
    if force_split:
        split = [d for d in cands if d <= B // 2]
        if split:          # keep grid >= 2 on v7x so both TensorCores get work
            cands = split
    for d in cands:
        cL = _pick_chunk_len(L, d, max_chunk_rows)
        if _step_vmem_bytes(d, L, cL, E2, Dd, enc_itemsize) <= step_budget:
            return d, cL
    raise ValueError(
        f"No batch tile of B={B} fits the per-step VMEM budget ({step_budget} bytes) "
        f"for L={L}, E2={E2}, Dd={Dd}; pad/shrink inputs or add an L grid axis.")


def attention_forward(hidden, encoder_outputs, mask, attn_weight, attn_bias, v_weight,
                      *, block_b=None, compute_dtype=jnp.bfloat16,
                      max_chunk_rows=4096):
    """hidden [B, Dd] f32, encoder_outputs [L, B, E2] (native layout, NOT transposed),
       mask [B, L] {0,1} (arbitrary pattern), attn_weight [Dd, Dd+E2] (PyTorch [out,in]),
       attn_bias [Dd], v_weight [1, Dd].  Returns softmax attention weights [B, L] f32."""
    L, B, E2 = encoder_outputs.shape
    Dd = hidden.shape[1]
    enc_itemsize = jnp.dtype(compute_dtype).itemsize

    plan = _device_vmem_plan()

    # Split attn.weight^T according to the (hidden, enc) concat order of the reference.
    Wt = attn_weight.T                                   # [Dd+E2, Dd]
    wh = Wt[:Dd, :].astype(jnp.float32)                  # multiplies hidden   [Dd, Dd]
    we = Wt[Dd:, :].astype(compute_dtype)                # multiplies enc      [E2, Dd]
    b = attn_bias.reshape(1, Dd).astype(jnp.float32)
    v = v_weight.reshape(1, Dd).astype(jnp.float32)
    hidden = hidden.astype(jnp.float32)
    # In a real model encoder_outputs would already be bf16 from the producer; the cast
    # here is dtype-only (the native [L, B, E2] layout is kept, no transpose).
    enc = encoder_outputs.astype(compute_dtype)
    mask_i32 = (mask != 0).astype(jnp.int32)             # full mask: arbitrary patterns

    if block_b is None:
        block_b, chunk_l = _pick_block_b(
            B, L, E2, Dd, enc_itemsize,
            step_budget=plan["step_budget"], force_split=plan["force_split"],
            max_chunk_rows=max_chunk_rows)
    else:
        assert B % block_b == 0, "block_b must divide the batch size"
        chunk_l = _pick_chunk_len(L, block_b, max_chunk_rows)
    grid = (B // block_b,)

    kernel = _make_attention_kernel(L, chunk_l, block_b, E2, Dd)

    # Advisory cost estimate: this call is HBM-bound on the enc read.
    cost = pl.CostEstimate(
        flops=2 * L * B * E2 * Dd + 2 * B * Dd * Dd,
        transcendentals=L * B * Dd + B * L,
        bytes_accessed=(L * B * E2 * enc_itemsize + 2 * B * L * 4 + B * Dd * 4
                        + (Dd + E2) * Dd * 4),
    )

    cp_kwargs = dict(dimension_semantics=("parallel",))
    if plan["vmem_limit_bytes"] is not None:
        cp_kwargs["vmem_limit_bytes"] = int(plan["vmem_limit_bytes"])

    return pl.pallas_call(
        kernel,
        out_shape=jax.ShapeDtypeStruct((B, L), jnp.float32),
        grid=grid,
        in_specs=[
            pl.BlockSpec((block_b, Dd), lambda i: (i, 0)),           # hidden
            pl.BlockSpec((L, block_b, E2), lambda i: (0, i, 0)),     # enc, native layout
            pl.BlockSpec((block_b, L), lambda i: (i, 0)),            # mask
            pl.BlockSpec((Dd, Dd), lambda i: (0, 0)),                # wh (VMEM resident)
            pl.BlockSpec((E2, Dd), lambda i: (0, 0)),                # we (VMEM resident)
            pl.BlockSpec((1, Dd), lambda i: (0, 0)),                 # bias
            pl.BlockSpec((1, Dd), lambda i: (0, 0)),                 # v
        ],
        out_specs=pl.BlockSpec((block_b, L), lambda i: (i, 0)),
        scratch_shapes=[pltpu.VMEM((L, block_b), jnp.float32)],      # scores scratch
        compiler_params=pltpu.CompilerParams(**cp_kwargs),
        cost_estimate=cost,
    )(hidden, enc, mask_i32, wh, we, b, v)


def attention_reference(hidden, encoder_outputs, mask, attn_weight, attn_bias, v_weight):
    """Pure-JAX f32 reference mirroring the PyTorch forward exactly."""
    L, B, _ = encoder_outputs.shape
    h_rep = jnp.repeat(hidden[:, None, :], L, axis=1)                   # [B, L, Dd]
    enc = jnp.transpose(encoder_outputs, (1, 0, 2))                     # [B, L, E2]
    cat = jnp.concatenate([h_rep, enc], axis=2)                         # [B, L, Dd+E2]
    energy = jnp.tanh(jnp.einsum('blk,dk->bld', cat, attn_weight,
                                 precision=jax.lax.Precision.HIGHEST) + attn_bias)
    attention = jnp.einsum('bld,od->blo', energy, v_weight,
                           precision=jax.lax.Precision.HIGHEST)[..., 0]  # [B, L]
    attention = jnp.where(mask == 0, -1.0e10, attention)
    return jax.nn.softmax(attention, axis=1)


if __name__ == "__main__":
    B = 32          # batch
    L = 32          # doc_len (sequence)
    ENC_HID = 16    # enc_hid_dim -> encoder feature dim E2 = 2*ENC_HID = 32
    DEC_HID = 32    # dec_hid_dim
    E2 = 2 * ENC_HID
    DIN = E2 + DEC_HID

    key = jax.random.PRNGKey(0)
    k_h, k_e, k_w, k_b, k_v, k_m = jax.random.split(key, 6)

    hidden = jax.random.normal(k_h, (B, DEC_HID), dtype=jnp.float32)
    encoder_outputs = jax.random.normal(k_e, (L, B, E2), dtype=jnp.float32)
    # Deterministic synthetic parameters (no checkpoint load).
    attn_weight = 0.1 * jax.random.normal(k_w, (DEC_HID, DIN), dtype=jnp.float32)
    attn_bias = 0.1 * jax.random.normal(k_b, (DEC_HID,), dtype=jnp.float32)
    v_weight = 0.1 * jax.random.normal(k_v, (1, DEC_HID), dtype=jnp.float32)
    # Arbitrary (non-prefix) mask; column 0 forced valid so every row has >= 1 token.
    mask = jax.random.bernoulli(k_m, 0.7, (B, L)).astype(jnp.int32)
    mask = mask.at[:, 0].set(1)

    ref = attention_reference(hidden, encoder_outputs, mask,
                              attn_weight, attn_bias, v_weight)

    # f32 compute path, auto-picked block_b / L-chunk (device-aware VMEM budgeting):
    # tight structural check of tiling, native-layout DMA, masking and softmax.
    out_f32 = attention_forward(hidden, encoder_outputs, mask, attn_weight, attn_bias,
                                v_weight, compute_dtype=jnp.float32)
    out_f32 = jax.block_until_ready(out_f32)
    assert out_f32.shape == (B, L)
    assert jnp.allclose(out_f32, ref, atol=2e-3, rtol=2e-3), "f32 kernel mismatch vs reference"

    # bf16 matmul-operand path with an explicit small tile and a forced L-chunking
    # (grid = 2, 4 chunks) to exercise the pipelined / chunked code paths.
    out_bf16 = attention_forward(hidden, encoder_outputs, mask, attn_weight, attn_bias,
                                 v_weight, block_b=16, compute_dtype=jnp.bfloat16,
                                 max_chunk_rows=8 * 16)
    out_bf16 = jax.block_until_ready(out_bf16)
    assert out_bf16.shape == (B, L)
    assert jnp.allclose(out_bf16, ref, atol=1e-2, rtol=1e-2), "bf16 kernel mismatch vs reference"

    print("KERNEL_OK")
</pallas_src>

<mosaic_0001>
module attributes {stable_mosaic.version = 11 : i64} {
  func.func @kernel(%arg0: i32, %arg1: memref<16x32xf32, #tpu.memory_space<vmem>>, %arg2: memref<32x16x32xf32, #tpu.memory_space<vmem>>, %arg3: memref<16x32xi32, #tpu.memory_space<vmem>>, %arg4: memref<32x32xf32, #tpu.memory_space<vmem>>, %arg5: memref<32x32xf32, #tpu.memory_space<vmem>>, %arg6: memref<1x32xf32, #tpu.memory_space<vmem>>, %arg7: memref<1x32xf32, #tpu.memory_space<vmem>>, %arg8: memref<16x32xf32, #tpu.memory_space<vmem>>, %arg9: memref<32x16xf32, #tpu.memory_space<vmem>>) attributes {dimension_semantics = [#tpu.dimension_semantics<parallel>], iteration_bounds = array<i64: 2>, scalar_prefetch = 0 : i64, scratch_operands = 1 : i64, tpu.core_type = #tpu.core_type<tc>, window_params = [{transform_indices = @transform_0, window_bounds = array<i64: 16, 32>}, {transform_indices = @transform_1, window_bounds = array<i64: 32, 16, 32>}, {transform_indices = @transform_2, window_bounds = array<i64: 16, 32>}, {pipeline_mode = #tpu.pipeline_mode<synchronous>, transform_indices = @transform_3, window_bounds = array<i64: 32, 32>}, {pipeline_mode = #tpu.pipeline_mode<synchronous>, transform_indices = @transform_4, window_bounds = array<i64: 32, 32>}, {pipeline_mode = #tpu.pipeline_mode<synchronous>, transform_indices = @transform_5, window_bounds = array<i64: 1, 32>}, {pipeline_mode = #tpu.pipeline_mode<synchronous>, transform_indices = @transform_6, window_bounds = array<i64: 1, 32>}, {transform_indices = @transform_7, window_bounds = array<i64: 16, 32>}]} {
    %c0 = arith.constant 0 : index
    %c0_0 = arith.constant 0 : index
    %0 = vector.load %arg1[%c0, %c0_0] : memref<16x32xf32, #tpu.memory_space<vmem>>, vector<16x32xf32>
    %c0_1 = arith.constant 0 : index
    %c0_2 = arith.constant 0 : index
    %1 = vector.load %arg4[%c0_1, %c0_2] : memref<32x32xf32, #tpu.memory_space<vmem>>, vector<32x32xf32>
    %cst = arith.constant dense<0.000000e+00> : vector<16x32xf32>
    %2 = tpu.matmul %0, %1, %cst {dimension_numbers = #tpu.dot_dimension_numbers<[1], [0], [0], [1], [0, 0, 1, 1], [], []>} : vector<16x32xf32>, vector<32x32xf32>, vector<16x32xf32> -> vector<16x32xf32>
    %c0_3 = arith.constant 0 : index
    %c0_4 = arith.constant 0 : index
    %3 = vector.load %arg6[%c0_3, %c0_4] : memref<1x32xf32, #tpu.memory_space<vmem>>, vector<1x32xf32>
    %4 = vector.broadcast %3 : vector<1x32xf32> to vector<16x32xf32>
    %5 = arith.addf %2, %4 : vector<16x32xf32>
    %c0_5 = arith.constant 0 : index
    %c0_6 = arith.constant 0 : index
    %6 = vector.load %arg5[%c0_5, %c0_6] : memref<32x32xf32, #tpu.memory_space<vmem>>, vector<32x32xf32>
    %c0_7 = arith.constant 0 : index
    %c0_8 = arith.constant 0 : index
    %7 = vector.load %arg7[%c0_7, %c0_8] : memref<1x32xf32, #tpu.memory_space<vmem>>, vector<1x32xf32>
    %8 = vector.shape_cast %7 : vector<1x32xf32> to vector<1x1x32xf32>
    %c0_9 = arith.constant 0 : index
    %c0_10 = arith.constant 0 : index
    %c0_11 = arith.constant 0 : index
    %9 = vector.load %arg2[%c0_9, %c0_10, %c0_11] : memref<32x16x32xf32, #tpu.memory_space<vmem>>, vector<32x16x32xf32>
    %10 = vector.shape_cast %9 : vector<32x16x32xf32> to vector<512x32xf32>
    %cst_12 = arith.constant dense<0.000000e+00> : vector<512x32xf32>
    %11 = tpu.matmul %10, %6, %cst_12 {dimension_numbers = #tpu.dot_dimension_numbers<[1], [0], [0], [1], [0, 0, 1, 1], [], []>} : vector<512x32xf32>, vector<32x32xf32>, vector<512x32xf32> -> vector<512x32xf32>
    %12 = vector.shape_cast %11 : vector<512x32xf32> to vector<32x16x32xf32>
    %13 = vector.shape_cast %5 : vector<16x32xf32> to vector<1x16x32xf32>
    %14 = vector.broadcast %13 : vector<1x16x32xf32> to vector<32x16x32xf32>
    %15 = arith.addf %12, %14 : vector<32x16x32xf32>
    %16 = math.tanh %15 : vector<32x16x32xf32>
    %17 = vector.broadcast %8 : vector<1x1x32xf32> to vector<32x16x32xf32>
    %18 = arith.mulf %16, %17 : vector<32x16x32xf32>
    %cst_13 = arith.constant dense<0.000000e+00> : vector<32x16xf32>
    %19 = vector.multi_reduction <add>, %18, %cst_13 [2] : vector<32x16x32xf32> to vector<32x16xf32>
    %c0_14 = arith.constant 0 : index
    %c0_15 = arith.constant 0 : index
    %20 = vector.load %arg9[%c0_14, %c0_15] : memref<32x16xf32, #tpu.memory_space<vmem>>, vector<32x16xf32>
    tpu.vector_store %arg9[%c0_14, %c0_15], %19 {strides = array<i32>} : memref<32x16xf32, #tpu.memory_space<vmem>>, vector<32x16xf32>,
    %c0_16 = arith.constant 0 : index
    %c0_17 = arith.constant 0 : index
    %21 = vector.load %arg9[%c0_16, %c0_17] : memref<32x16xf32, #tpu.memory_space<vmem>>, vector<32x16xf32>
    %22 = tpu.transpose %21, [1, 0] : vector<32x16xf32> -> vector<16x32xf32>
    %c0_18 = arith.constant 0 : index
    %c0_19 = arith.constant 0 : index
    %23 = vector.load %arg3[%c0_18, %c0_19] : memref<16x32xi32, #tpu.memory_space<vmem>>, vector<16x32xi32>
    %c0_i32 = arith.constant 0 : i32
    %24 = vector.broadcast %c0_i32 : i32 to vector<16x32xi32>
    %25 = arith.cmpi ne, %23, %24 : vector<16x32xi32>
    %cst_20 = arith.constant -1.000000e+10 : f32
    %26 = vector.broadcast %cst_20 : f32 to vector<16x32xf32>
    %27 = arith.select %25, %22, %26 : vector<16x32xi1>, vector<16x32xf32>
    %cst_21 = arith.constant dense<0xFF800000> : vector<16xf32>
    %28 = vector.multi_reduction <maximumf>, %27, %cst_21 [1] : vector<16x32xf32> to vector<16xf32>
    %29 = vector.shape_cast %28 : vector<16xf32> to vector<16x1xf32>
    %30 = vector.broadcast %29 : vector<16x1xf32> to vector<16x32xf32>
    %31 = arith.subf %27, %30 : vector<16x32xf32>
    %32 = math.exp %31 : vector<16x32xf32>
    %cst_22 = arith.constant dense<0.000000e+00> : vector<16xf32>
    %33 = vector.multi_reduction <add>, %32, %cst_22 [1] : vector<16x32xf32> to vector<16xf32>
    %34 = vector.shape_cast %33 : vector<16xf32> to vector<16x1xf32>
    %35 = tpu.reciprocal %34 {approx = true} : vector<16x1xf32> -> vector<16x1xf32>
    %36 = vector.broadcast %35 : vector<16x1xf32> to vector<16x32xf32>
    %37 = arith.mulf %32, %36 : vector<16x32xf32>
    %c0_23 = arith.constant 0 : index
    %c0_24 = arith.constant 0 : index
    %38 = vector.load %arg8[%c0_23, %c0_24] : memref<16x32xf32, #tpu.memory_space<vmem>>, vector<16x32xf32>
    tpu.vector_store %arg8[%c0_23, %c0_24], %37 {strides = array<i32>} : memref<16x32xf32, #tpu.memory_space<vmem>>, vector<16x32xf32>,
    return
  }
  func.func @transform_0(%arg0: i32) -> (i32, i32) {
    %c0_i32 = arith.constant 0 : i32
    %c0_i32_0 = arith.constant 0 : i32
    return %arg0, %c0_i32 : i32, i32
  }
  func.func @transform_1(%arg0: i32) -> (i32, i32, i32) {
    %c0_i32 = arith.constant 0 : i32
    %c0_i32_0 = arith.constant 0 : i32
    %c0_i32_1 = arith.constant 0 : i32
    return %c0_i32, %arg0, %c0_i32_0 : i32, i32, i32
  }
  func.func @transform_2(%arg0: i32) -> (i32, i32) {
    %c0_i32 = arith.constant 0 : i32
    %c0_i32_0 = arith.constant 0 : i32
    return %arg0, %c0_i32 : i32, i32
  }
  func.func @transform_3(%arg0: i32) -> (i32, i32) {
    %c0_i32 = arith.constant 0 : i32
    %c0_i32_0 = arith.constant 0 : i32
    %c0_i32_1 = arith.constant 0 : i32
    return %c0_i32, %c0_i32_0 : i32, i32
  }
  func.func @transform_4(%arg0: i32) -> (i32, i32) {
    %c0_i32 = arith.constant 0 : i32
    %c0_i32_0 = arith.constant 0 : i32
    %c0_i32_1 = arith.constant 0 : i32
    return %c0_i32, %c0_i32_0 : i32, i32
  }
  func.func @transform_5(%arg0: i32) -> (i32, i32) {
    %c0_i32 = arith.constant 0 : i32
    %c0_i32_0 = arith.constant 0 : i32
    %c0_i32_1 = arith.constant 0 : i32
    return %c0_i32, %c0_i32_0 : i32, i32
  }
  func.func @transform_6(%arg0: i32) -> (i32, i32) {
    %c0_i32 = arith.constant 0 : i32
    %c0_i32_0 = arith.constant 0 : i32
    %c0_i32_1 = arith.constant 0 : i32
    return %c0_i32, %c0_i32_0 : i32, i32
  }
  func.func @transform_7(%arg0: i32) -> (i32, i32) {
    %c0_i32 = arith.constant 0 : i32
    %c0_i32_0 = arith.constant 0 : i32
    return %arg0, %c0_i32 : i32, i32
  }
}

</mosaic_0001>

<bundles_post_ra>
// kernel: tpu_custom_call.1
= control target key start
LH: loop header
LB: loop body
LE: loop exit
PB: predicated region body
PF: predicated region fallthrough
CT: control target
= control target key end

     0   :  { %s3908_s0 = inlined_call_operand.hbm [shape: f32[32,32], index: 0, kind: input, shape index: {}]   ;;  %s3909_s1 = inlined_call_operand.hbm [shape: f32[32,32,32], index: 1, kind: input, shape index: {}]   ;;  %s3910_s2 = inlined_call_operand.hbm [shape: s32[32,32], index: 2, kind: input, shape index: {}]   ;;  %s3911_s3 = inlined_call_operand.hbm [shape: f32[32,32], index: 3, kind: input, shape index: {}]   ;;  %s3912_s4 = inlined_call_operand.hbm [shape: f32[32,32], index: 4, kind: input, shape index: {}]   ;;  %s3913_s5 = inlined_call_operand.vmem [shape: f32[1,32], index: 5, kind: input, shape index: {}]   ;;  %s3914_s6 = inlined_call_operand.vmem [shape: f32[1,32], index: 6, kind: input, shape index: {}]   ;;  %s3915_s7 = inlined_call_operand.hbm [shape: f32[32,32], index: 7, kind: output, shape index: {}]  }
   0x1   :  { %3927 = sst [smem:[#allocation23_spill]] %s3908_s0 }
   0x2   :  { %12 = vsyncpa [#allocation4], 0 }
   0x3   :  { %14 = vsyncpa [#allocation4 + $0x1], 0 }
   0x4   :  { %15 = vsyncpa [#allocation7], 0 }
   0x5   :  { %17 = vsyncpa [#allocation7 + $0x1], 0 }
   0x6   :  { %18 = vsyncpa [#allocation10], 0 }
   0x7   :  { %19 = vsyncpa [#allocation5], 0 }
   0x8   :  { %21 = vsyncpa [#allocation5 + $0x1], 0  ;;  %s2954_s24 = smov 0   ;;  %s2956_s25 = smov 0  }
   0x9   :  { %s2958_s26 = smov 0   ;;  %s2960_s27 = smov 0  }
   0xa LB: > { %s2975_s28 = sadd.s32 4294967295, %s2895_s27   ;;  %s2178_s29 = sadd.s32 4294967294, %s2895_s27   ;;  %s2895_s27 = sphi %s2960_s27, %s3949_s27   ;;  %s2891_s26 = sphi %s2958_s26, %s3953_s26   ;;  %s2887_s25 = sphi %s2956_s25, %s3952_s25   ;;  %s2883_s24 = sphi %s2954_s24, %s3951_s24  }
   0xb   : > { %s2979_s30 = sadd.s32 1, %s2895_s27   ;;  %s34_s8 = sadd.s32 1, %s2891_s26 }
   0xc   : > { %3928 = sst [smem:[#allocation20_spill]] %s2979_s30  ;;  %s31_s9 = ssub.s32 %s2895_s27, %s2979_s30 }
   0xd   : > { %p41_p0 = scmp.ne.s32.totalorder %s2891_s26, %s2887_s25  ;;  %p32_p1 = scmp.eq.s32.totalorder %s31_s9, 0 }
   0xe   : > { %p42_p2 = scmp.eq.s32.totalorder %s2895_s27, 0  ;;  %p47_p3 = scmp.ne.s32.totalorder %s2887_s25, %s2883_s24 }
   0xf   : > { %p3916_p4 = scmp.eq.s32.totalorder %s2975_s28, 0  ;;  %p207_p7 = scmp.eq.s32.totalorder %s2975_s28, 1 }
  0x10   : > { %s2991_s10 = scalar_select %p32_p1, %s2891_s26, %s34_s8  }
  0x11   : > { %p2993_p5 = por %p42_p2, %p41_p0  ;;  %p2999_p6 = por %p3916_p4, %p47_p3 }
  0x12   : > { %3929 = sst [smem:[#allocation21_spill]] %s2991_s10  ;;  %p213_p8 = scmp.eq.s32.totalorder %s2178_s29, 1 }
  0x13   : > { %s3930_s11 = scalar_select %p2993_p5, 1, 0 }
  0x14   : > { %s3931_s12 = scalar_select %p2999_p6, 1, 0 }
  0x15   : > { %p2179_p9 = scmp.ge.s32.totalorder %s2895_s27, 1  ;;  %p220_p10 = scmp.lt.s32.totalorder %s2895_s27, 3 }
  0x16   : > { %p3006_p11 = por %p207_p7, %p41_p0  ;;  %p3010_p12 = por %p213_p8, %p47_p3 }
  0x17   : > { %p3014_p13 = pnand %p2179_p9, %p220_p10  ;;  %s2897_s16 = smov [#allocation9]  }
  0x18   : > { %s3932_s13 = scalar_select %p3006_p11, 1, 0 }
  0x19   : > { %s3933_s14 = scalar_select %p3010_p12, 1, 0 }
  0x1a   : > { %s3935_s15 = scalar_select %p3014_p13, 1, 0 }
  0x1b   : > { %3934 = sst [smem:[#allocation22_spill]] %s3933_s14  ;;  %p2510_p1 = pneg %p3014_p13 }
  0x1c   : > { %s232_s17 = sshll.u32 %s2897_s16, 4  ;;  %s2898_s19 = smov [#allocation11]   ;;  %s233_s17 = int_to_ptr.vmem [resolvable:$true] %s232_s17 }
  0x1d   : > { %p3022_p2 = pnand %p2510_p1, %p3916_p4  ;;  %s245_s20 = sshll.u32 %s2898_s19, 4  ;;  %s3026_s20 = int_to_ptr.vmem [resolvable:$true] %s245_s20 }
  0x1e   : > { %s2709_s23 = scalar_lea.hbm %s3911_s3, 512 }
  0x1f   : > { %p2710_p0 = scmp.ne.s32.totalorder %s3911_s3, %s2709_s23  ;;  %p2711_p3 = pneg %p3022_p2 }
  0x20   : > { %p2716_p9 = scmp.lt.u32.totalorder %s2709_s23, %s3911_s3 }
  0x21   : > { %p2712_p7 = pnand %p2711_p3, %p2710_p0 }
  0x23   : > { %p2713_p8 = pneg %p2712_p7 }
  0x25   : > { %p2718_p10 = pnand %p2716_p9, %p2713_p8 }
  0x27   : > { %2721 = shalt.err (!%p2718_p10)
}
  0x28   : > { %s2722_s19 = scalar_lea.vmem %s233_s17, 512  ;;  %p2730_p11 = scmp.lt.s32.totalorder %s233_s17, %s233_s17 }
  0x29   : > { %p2723_p1 = scmp.ne.s32.totalorder %s233_s17, %s2722_s19  ;;  %p2731_p6 = scmp.lt.s32.totalorder %s2722_s19, %s2722_s19 }
  0x2b   : > { %p2725_p4 = pnand %p2723_p1, %p2711_p3  ;;  %p2732_p13 = por %p2731_p6, %p2730_p11 }
  0x2d   : > { %p2726_p12 = pneg %p2725_p4 }
  0x2f   : > { %p2733_p5 = pnand %p2732_p13, %p2726_p12 }
  0x31   : > { %2736 = shalt.err (!%p2733_p5)
}
  0x32   : > { %s2899_s21 = smov 128   ;;  %s2900_s22 = smov 8  }
  0x33   : > { %2513 = dma.hbm_to_vmem [thread:$0]  (!%p3022_p2), %s3911_s3, 512, %s233_s17, [#allocation10], %s2899_s21, %s2899_s21, %s2900_s22  }
  0x34   : > { %s2737_s16 = scalar_lea.hbm %s3912_s4, 512 }
  0x35   : > { %p2738_p4 = scmp.ne.s32.totalorder %s3912_s4, %s2737_s16  ;;  %p2744_p11 = scmp.lt.u32.totalorder %s2737_s16, %s3912_s4 }
  0x37   : > { %p2740_p5 = pnand %p2738_p4, %p2711_p3 }
  0x39   : > { %p2741_p6 = pneg %p2740_p5 }
  0x3b   : > { %p2746_p12 = pnand %p2744_p11, %p2741_p6 }
  0x3d   : > { %2749 = shalt.err (!%p2746_p12)
}
  0x3e   : > { %s2750_s17 = scalar_lea.vmem %s3026_s20, 512  ;;  %p2758_p8 = scmp.lt.s32.totalorder %s3026_s20, %s3026_s20 }
  0x3f   : > { %p2751_p13 = scmp.ne.s32.totalorder %s3026_s20, %s2750_s17  ;;  %p2759_p9 = scmp.lt.s32.totalorder %s2750_s17, %s2750_s17 }
  0x41   : > { %p2753_p0 = pnand %p2751_p13, %p2711_p3  ;;  %p2760_p10 = por %p2759_p9, %p2758_p8 }
  0x43   : > { %p2754_p7 = pneg %p2753_p0 }
  0x45   : > { %p2761_p1 = pnand %p2760_p10, %p2754_p7 }
  0x47   : > { %2764 = shalt.err (!%p2761_p1)
}
  0x48   : > { %2516 = dma.hbm_to_vmem [thread:$0]  (!%p3022_p2), %s3912_s4, 512, %s3026_s20, [#allocation10], %s2899_s21, %s2899_s21, %s2900_s22  }
  0x49   : > { %p2182_p4 = scmp.ge.s32.totalorder %s2895_s27, 2 }
  0x4a   : > { %s3079_s14 = sand.u32 (!%p2182_p4), 1, %s2891_s26   ;;  %s3082_s23 = sshll.u32 (!%p2182_p4), %s2895_s27, 8 }
  0x4b   : > { %261 = sbr.rel (%p2182_p4) target bundleno = 143 (0x8f), region = 32  ;;  %s3924_s18 = sshll.u32 (!%p2182_p4), %s3079_s14, 4 }
  0x4c   : > { %s3937_s0 = sld [smem:[#allocation23_spill]] (!%p2182_p4)  ;;  %s269_s21 = scalar_lea.vmem (!%p2182_p4), [#allocation3], %s3924_s18 }
  0x4d   : > { %s276_s22 = sshll.u32 (!%p2182_p4), %s269_s21, 4  ;;  %s266_s9 = scalar_lea.sflag (!%p2182_p4), [#allocation4], %s3079_s14  ;;  %s3093_s22 = int_to_ptr.vmem [resolvable:$true] %s276_s22 }
  0x4e   : > { %p3938_p3 = scmp.ne.s32.totalorder (!%p2182_p4), %s3930_s11, 0 }
  0x52   : > { %s3089_s20 = scalar_lea.hbm %s3937_s0, %s3082_s23  ;;  %s2769_s30 = scalar_lea.hbm %s3937_s0, 512 }
  0x53   : > { %s2765_s16 = scalar_lea.hbm %s3089_s20, 256  ;;  %p2770_p11 = scmp.lt.u32.totalorder %s3089_s20, %s3937_s0 }
  0x54   : > { %p2766_p2 = scmp.ne.s32.totalorder %s3089_s20, %s2765_s16  ;;  %p2771_p12 = scmp.lt.u32.totalorder %s2769_s30, %s2765_s16 }
  0x55   : > { %p2773_p0 = scmp.lt.u32.totalorder %s2765_s16, %s3089_s20 }
  0x56   : > { %p2767_p5 = pnand %p2766_p2, %p3938_p3  ;;  %p2772_p13 = por %p2771_p12, %p2770_p11 }
  0x58   : > { %p2768_p6 = pneg %p2767_p5  ;;  %p2774_p7 = por %p2773_p0, %p2772_p13 }
  0x5a   : > { %p2775_p8 = pnand %p2774_p7, %p2768_p6 }
  0x5c   : > { %2778 = shalt.err (!%p2775_p8)
}
  0x5d   : > { %s2779_s8 = scalar_lea.vmem %s3093_s22, 256  ;;  %s2901_s21 = smov [#allocation3]  }
  0x5e   : > { %p2780_p9 = scmp.ne.s32.totalorder %s3093_s22, %s2779_s8  ;;  %s2783_s19 = sshll.u32 %s2901_s21, 4  ;;  %s2784_s19 = int_to_ptr.vmem [resolvable:$false] %s2783_s19 }
  0x5f   : > { %s2785_s17 = scalar_lea.vmem %s2784_s19, 512  ;;  %p2786_p2 = scmp.lt.s32.totalorder %s3093_s22, %s2784_s19 }
  0x60   : > { %p2781_p10 = pnand %p2780_p9, %p3938_p3  ;;  %p2787_p5 = scmp.lt.s32.totalorder %s2785_s17, %s2779_s8 }
  0x62   : > { %p2782_p1 = pneg %p2781_p10  ;;  %p2788_p11 = por %p2787_p5, %p2786_p2 }
  0x64   : > { %p2789_p12 = pnand %p2788_p11, %p2782_p1 }
  0x66   : > { %2792 = shalt.err (!%p2789_p12)
}
  0x67   : > { %s3925_s16 = smov 128   ;;  %s3926_s30 = smov 8  }
  0x68   : > { %2491 = dma.hbm_to_vmem [thread:$0]  (%p3938_p3), %s3089_s20, 256, %s3093_s22, %s266_s9, %s3925_s16, %s3925_s16, %s3926_s30  }
  0x69   : > { %s286_s10 = sand.u32 1, %s2895_s27   ;;  %s2186_s29 = sshll.u32 %s3079_s14, 9 }
  0x6a   : > { %s296_s19 = scalar_lea.hbm %s3909_s1, %s3082_s23  ;;  %s290_s18 = scalar_lea.vmem [#allocation6], %s2186_s29 }
  0x6b   : > { %s2492_s17 = scalar_select %p3938_p3, [#allocation0], [#allocation15] }
  0x6c   : > { %s309_s20 = sshll.u32 %s290_s18, 4  ;;  %s2904_s9 = smov 512   ;;  %s310_s20 = int_to_ptr.vmem [resolvable:$true] %s309_s20 }
  0x6d   : > { %s301_s22 = sld [smem:[%s2492_s17]]   ;;  %s2905_s16 = smov 256  }
  0x6e   : > { %2493 = sst [smem:[#allocation14]] (%p3938_p3), %s2904_s9  ;;  %s2906_s30 = smov 2  }
  0x6f   : > { %2494 = sst [smem:[#allocation14 + $0x1]] (%p3938_p3), %s2905_s16  ;;  %s2907_s0 = smov 128  }
  0x70   : > { %2495 = sst [smem:[#allocation14 + $0x2]] (%p3938_p3), %s2906_s30  ;;  %s2908_s29 = smov 8  }
  0x71   : > { %2496 = sst [smem:[#allocation14 + $0x3]] (%p3938_p3), %s2907_s0  ;;  %s3142_s21 = scalar_lea.sflag [#allocation7], %s286_s10 }
  0x72   : > { %2497 = sst [smem:[#allocation14 + $0x4]] (%p3938_p3), %s2907_s0  ;;  %s2909_s17 = smov [#allocation13]  }
  0x73   : > { %s2189_s8 = sshll.u32 %s301_s22, 26  ;;  %2498 = sst [smem:[#allocation14 + $0x5]] (%p3938_p3), %s2908_s29 }
  0x74   : > { %s2190_s18 = sadd.s32 134217728, %s2189_s8  ;;  %s3151_s9 = scalar_lea.hbm %s3910_s2, %s3082_s23 }
  0x75   : > { %2499 = dma.general (%p3938_p3), %s296_s19, 8192, %s310_s20, %s3142_s21, %s2909_s17, [#allocation14], %s2190_s18, 0  }
  0x76   : > { %s3939_s0 = sshll.u32 %s3079_s14, 4  ;;  %s2793_s8 = scalar_lea.hbm %s3151_s9, 256 }
  0x77   : > { %s336_s22 = scalar_lea.vmem [#allocation8], %s3939_s0  ;;  %p2794_p6 = scmp.ne.s32.totalorder %s3151_s9, %s2793_s8 }
  0x78   : > { %s343_s10 = sshll.u32 %s336_s22, 4  ;;  %s2797_s29 = scalar_lea.hbm %s3910_s2, 512  ;;  %s3155_s10 = int_to_ptr.vmem [resolvable:$true] %s343_s10 }
  0x79   : > { %p2795_p13 = pnand %p2794_p6, %p3938_p3  ;;  %p2798_p7 = scmp.lt.u32.totalorder %s3151_s9, %s3910_s2 }
  0x7a   : > { %p2799_p8 = scmp.lt.u32.totalorder %s2797_s29, %s2793_s8  ;;  %p2801_p10 = scmp.lt.u32.totalorder %s2793_s8, %s3151_s9 }
  0x7b   : > { %p2796_p0 = pneg %p2795_p13 }
  0x7c   : > { %p2800_p9 = por %p2799_p8, %p2798_p7 }
  0x7e   : > { %p2802_p1 = por %p2801_p10, %p2800_p9 }
  0x80   : > { %p2803_p2 = pnand %p2802_p1, %p2796_p0 }
  0x82   : > { %2806 = shalt.err (!%p2803_p2)
}
  0x83   : > { %s2807_s14 = scalar_lea.vmem %s3155_s10, 256  ;;  %s2910_s17 = smov [#allocation8]  }
  0x84   : > { %p2808_p5 = scmp.ne.s32.totalorder %s3155_s10, %s2807_s14  ;;  %s2811_s16 = sshll.u32 %s2910_s17, 4  ;;  %s2812_s16 = int_to_ptr.vmem [resolvable:$false] %s2811_s16 }
  0x85   : > { %s2813_s30 = scalar_lea.vmem %s2812_s16, 512  ;;  %p2814_p6 = scmp.lt.s32.totalorder %s3155_s10, %s2812_s16 }
  0x86   : > { %p2809_p11 = pnand %p2808_p5, %p3938_p3  ;;  %p2815_p13 = scmp.lt.s32.totalorder %s2813_s30, %s2807_s14 }
  0x88   : > { %p2810_p12 = pneg %p2809_p11  ;;  %p2816_p7 = por %p2815_p13, %p2814_p6 }
  0x8a   : > { %p2817_p8 = pnand %p2816_p7, %p2810_p12 }
  0x8c   : > { %2820 = shalt.err (!%p2817_p8)
}
  0x8d   : > { %s3940_s0 = smov 8   ;;  %s3941_s22 = smov 128  }
  0x8e   : > { %2500 = dma.hbm_to_vmem [thread:$0]  (%p3938_p3), %s3151_s9, 256, %s3155_s10, %s3142_s21, %s3941_s22, %s3941_s22, %s3940_s0  }
  0x8f PF: > { %p3942_p0 = scmp.ne.s32.totalorder %s3935_s15, 0 }
  0x90   : > { %s3185_s8 = sand.u32 (!%p3942_p0), 1, %s2887_s25   ;;  %p3943_p9 = scmp.ne.s32.totalorder (!%p3942_p0), %s3931_s12, 0 }
  0x91   : > { %355 = sbr.rel (%p3942_p0) target bundleno = 1132 (0x46c), region = 48  ;;  %s3188_s19 = sshll.u32 (!%p3942_p0), %s3185_s8, 4 }
  0x92   : > { %s358_s11 = scalar_lea.sflag (!%p3942_p0), [#allocation4], %s3185_s8  ;;  %s361_s20 = scalar_lea.vmem (!%p3942_p0), [#allocation3], %s3188_s19 }
  0x98   : > { %2866 = dma.done.wait (%p3943_p9), %s358_s11, 256  }
  0x99   : > { %2868 = vsyncadd (%p3943_p9), %s358_s11, 4294967040  ;;  %s366_s15 = sand.u32 1, %s2975_s28   ;;  %s2196_s21 = sshll.u32 %s3185_s8, 9 }
  0x9a   : > { %s367_s9 = scalar_lea.sflag [#allocation7], %s366_s15  ;;  %s3198_s10 = scalar_lea.vmem [#allocation6], %s2196_s21 }
  0x9b   : > { %2870 = dma.done.wait (%p3943_p9), %s367_s9, 8448  }
  0x9c   : > { %2872 = vsyncadd (%p3943_p9), %s367_s9, 4294958848  ;;  %s379_s29 = scalar_lea.vmem [#allocation8], %s3188_s19  ;;  %p3944_p3 = scmp.eq.s32.totalorder %s2975_s28, 0 }
  0x9e   : > { %2874 = dma.done.wait (%p3944_p3), [#allocation10], 1024   ;;  %p3945_p10 = pmov %p3944_p3 }
  0x9f   : > { %v434_v0 = vld [vmem:[#allocation9] sm:$0xff]  ;;  %v435_v1 = vld [vmem:[#allocation9 + $0x8] sm:$0xff]  ;;  %vm445_vm0 = vcmask 261120   ;;  %v436_v5 = vld [vmem:[#allocation9 + $0x10] sm:$0xff]  ;;  %vm1638_vm1 = vcmask 130112   ;;  %vm1919_vm2 = vcmask 1041409  }
  0xa0   : > { %2876 = vsyncadd (%p3945_p10), [#allocation10], 4294966272  ;;  %v527_v2 = vld [vmem:[#allocation11] sm:$0xff]  ;;  %v2467_v3 = vpack.c.bf16 %v435_v1, %v434_v0  ;;  %v528_v4 = vld [vmem:[#allocation11 + $0x8] sm:$0xff]  ;;  %vm1921_vm3 = vcmask 1042434   ;;  %vm1923_vm4 = vcmask 1043459  }
  0xa1   : > { %v437_v6 = vld [vmem:[#allocation9 + $0x18] sm:$0xff]  ;;  %v2475_v7 = vpack.c.bf16 %v528_v4, %v527_v2  ;;  %v529_v9 = vld [vmem:[#allocation11 + $0x10] sm:$0xff]  ;;  %v564_v16 = vld [vmem:[%s3198_s10 + $0x100] sm:$0xff]  ;;  %vm1925_vm5 = vcmask 1044484   ;;  %vm1927_vm6 = vcmask 1045509   ;;  %vm1929_vm7 = vcmask 1046534  }
  0xa2   : > { %v2471_v8 = vpack.c.bf16 %v437_v6, %v436_v5  ;;  %v530_v10 = vld [vmem:[#allocation11 + $0x18] sm:$0xff]  ;;  %v432_v11 = vld [vmem:[%s361_s20] sm:$0xff]  ;;  %2468 = vmatprep.subr.bf16.mxu0 %v2467_v3  ;;  %v565_v18 = vld [vmem:[%s3198_s10 + $0x108] sm:$0xff]  ;;  %vm1931_vm8 = vcmask 1047559   ;;  %vm1958_vm9 = vcmask 130048   ;;  %s2277_s17 = sshll.u32 %s2975_s28, 8 }
  0xa3   : > { %v2479_v12 = vpack.c.bf16 %v530_v10, %v529_v9  ;;  %2360 = vmatprep.mubr.msk.f32.mxu0 %vm445_vm0, %v432_v11  ;;  %v562_v13 = vld [vmem:[%s3198_s10 + $0xf0] sm:$0xff]  ;;  %2483 = vmatprep.subr.bf16.mxu1 %v2475_v7  ;;  %v433_v14 = vld [vmem:[%s361_s20 + $0x8] sm:$0xff]  ;;  %v532_v17 = vld [vmem:[%s3198_s10] sm:$0xff]  ;;  %s427_s16 = scalar_lea.vmem [#allocation12], %s3188_s19  ;;  %s3861_s11 = scalar_lea.hbm %s3915_s7, %s2277_s17 }
  0xa4   : > { %2470 = vmatpush3.bf16.msra.mxu0 %v2467_v3  ;;  %2485 = vmatpush3.bf16.msra.mxu1 %v2475_v7  ;;  %v563_v15 = vld [vmem:[%s3198_s10 + $0xf8] sm:$0xff]  ;;  %v566_v19 = vld [vmem:[%s3198_s10 + $0x110] sm:$0xff]  ;;  %v533_v20 = vld [vmem:[%s3198_s10 + $0x8] sm:$0xff]  ;;  %s2043_s30 = sshll.u32 %s427_s16, 4  ;;  %s2030_s20 = scalar_lea.sflag [#allocation5], %s3185_s8  ;;  %s3863_s30 = int_to_ptr.vmem [resolvable:$true] %s2043_s30 }
  0xa5   : > { %2472 = vmatprep.subr.bf16.mxu0 %v2471_v8  ;;  %2484 = vmatprep.subr.bf16.mxu1 %v2479_v12  ;;  %v567_v21 = vld [vmem:[%s3198_s10 + $0x118] sm:$0xff]  ;;  %v534_v22 = vld [vmem:[%s3198_s10 + $0x10] sm:$0xff]  ;;  %v568_v23 = vld [vmem:[%s3198_s10 + $0x120] sm:$0xff]  ;;  %s2821_s28 = scalar_lea.vmem %s3863_s30, 256  ;;  %p3946_p2 = scmp.ne.s32.totalorder %s3932_s13, 0 }
  0xa6   : > { %2416 = vmatprep.mubr.msk.f32.mxu1 %vm445_vm0, %v562_v13  ;;  %v535_v24 = vld [vmem:[%s3198_s10 + $0x18] sm:$0xff]  ;;  %v569_v25 = vld [vmem:[%s3198_s10 + $0x128] sm:$0xff]  ;;  %v536_v26 = vld [vmem:[%s3198_s10 + $0x20] sm:$0xff]  ;;  %p2822_p1 = scmp.ne.s32.totalorder %s3863_s30, %s2821_s28  ;;  %s2911_s19 = smov [#allocation12]  }
  0xa7   : > { %v570_v27 = vld [vmem:[%s3198_s10 + $0x130] sm:$0xff]  ;;  %v537_v28 = vld [vmem:[%s3198_s10 + $0x28] sm:$0xff]  ;;  %v571_v29 = vld [vmem:[%s3198_s10 + $0x138] sm:$0xff]  ;;  %s2825_s15 = sshll.u32 %s2911_s19, 4  ;;  %s2826_s15 = int_to_ptr.vmem [resolvable:$false] %s2825_s15 }
  0xa8   : > { %2474 = vmatpush3.bf16.msra.mxu0 %v2471_v8  ;;  %2486 = vmatpush3.bf16.msra.mxu1 %v2479_v12  ;;  %v538_v30 = vld [vmem:[%s3198_s10 + $0x30] sm:$0xff]  ;;  %v572_v31 = vld [vmem:[%s3198_s10 + $0x140] sm:$0xff]  ;;  %v539_v32 = vld [vmem:[%s3198_s10 + $0x38] sm:$0xff]  ;;  %p2823_p5 = pnand %p2822_p1, %p3946_p2  ;;  %s2827_s21 = scalar_lea.vmem %s2826_s15, 512 }
  0xa9   : > { %2476 = vmatprep.subr.bf16.mxu0 %v2475_v7  ;;  %v573_v33 = vld [vmem:[%s3198_s10 + $0x148] sm:$0xff]  ;;  %v540_v34 = vld [vmem:[%s3198_s10 + $0x40] sm:$0xff]  ;;  %v574_v35 = vld [vmem:[%s3198_s10 + $0x150] sm:$0xff]  ;;  %p2828_p12 = scmp.lt.s32.totalorder %s3863_s30, %s2826_s15  ;;  %p2829_p6 = scmp.lt.s32.totalorder %s2827_s21, %s2821_s28 }
  0xaa   : > { %v541_v36 = vld [vmem:[%s3198_s10 + $0x48] sm:$0xff]  ;;  %v575_v37 = vld [vmem:[%s3198_s10 + $0x158] sm:$0xff]  ;;  %v542_v38 = vld [vmem:[%s3198_s10 + $0x50] sm:$0xff]  ;;  %p2824_p11 = pneg %p2823_p5 }
  0xab   : > { %2361 = vmatmul.mubr.msk.f32.vlgmr.msra.gmra.mrb[0].mxu0 %vm445_vm0, %v433_v14  ;;  %2417 = vmatmul.mubr.msk.f32.vlgmr.msra.gmra.mrb[0].mxu1 %vm445_vm0, %v563_v15  ;;  %v576_v39 = vld [vmem:[%s3198_s10 + $0x160] sm:$0xff]  ;;  %v543_v40 = vld [vmem:[%s3198_s10 + $0x58] sm:$0xff]  ;;  %v577_v41 = vld [vmem:[%s3198_s10 + $0x168] sm:$0xff]  ;;  %p2830_p13 = por %p2829_p6, %p2828_p12 }
  0xac   : > { %2478 = vmatpush3.bf16.msra.mxu0 %v2475_v7  ;;  %2419 = vmatprep.mubr.msk.f32.mxu1 %vm445_vm0, %v564_v16  ;;  %v544_v42 = vld [vmem:[%s3198_s10 + $0x60] sm:$0xff]  ;;  %v578_v43 = vld [vmem:[%s3198_s10 + $0x170] sm:$0xff]  ;;  %v545_v44 = vld [vmem:[%s3198_s10 + $0x68] sm:$0xff] }
  0xad   : > { %2480 = vmatprep.subr.bf16.mxu0 %v2479_v12  ;;  %2371 = vmatprep.mubr.msk.f32.mxu0 %vm445_vm0, %v532_v17  ;;  %v579_v45 = vld [vmem:[%s3198_s10 + $0x178] sm:$0xff]  ;;  %v546_v46 = vld [vmem:[%s3198_s10 + $0x70] sm:$0xff]  ;;  %v580_v47 = vld [vmem:[%s3198_s10 + $0x180] sm:$0xff]  ;;  %p2831_p7 = pnand %p2830_p13, %p2824_p11 }
  0xae   : > { %v547_v48 = vld [vmem:[%s3198_s10 + $0x78] sm:$0xff]  ;;  %v581_v49 = vld [vmem:[%s3198_s10 + $0x188] sm:$0xff]  ;;  %v548_v50 = vld [vmem:[%s3198_s10 + $0x80] sm:$0xff] }
  0xaf   : > { %2420 = vmatmul.mubr.msk.f32.gmra.mrb[2].mxu1 %vm445_vm0, %v565_v18  ;;  %v582_v51 = vld [vmem:[%s3198_s10 + $0x190] sm:$0xff]  ;;  %v549_v52 = vld [vmem:[%s3198_s10 + $0x88] sm:$0xff]  ;;  %v583_v53 = vld [vmem:[%s3198_s10 + $0x198] sm:$0xff] }
  0xb0   : > { %2482 = vmatpush3.bf16.msra.mxu0 %v2479_v12  ;;  %2422 = vmatprep.mubr.msk.f32.mxu1 %vm445_vm0, %v566_v19  ;;  %v550_v54 = vld [vmem:[%s3198_s10 + $0x90] sm:$0xff]  ;;  %v584_v55 = vld [vmem:[%s3198_s10 + $0x1a0] sm:$0xff]  ;;  %v551_v56 = vld [vmem:[%s3198_s10 + $0x98] sm:$0xff] }
  0xb1   : > { %v585_v57 = vld [vmem:[%s3198_s10 + $0x1a8] sm:$0xff]  ;;  %v552_v58 = vld [vmem:[%s3198_s10 + $0xa0] sm:$0xff]  ;;  %v586_v59 = vld [vmem:[%s3198_s10 + $0x1b0] sm:$0xff] }
  0xb2   : > { %v553_v60 = vld [vmem:[%s3198_s10 + $0xa8] sm:$0xff]  ;;  %v587_v61 = vld [vmem:[%s3198_s10 + $0x1b8] sm:$0xff]  ;;  %v554_v62 = vld [vmem:[%s3198_s10 + $0xb0] sm:$0xff] }
  0xb3   : > { %2372 = vmatmul.mubr.msk.f32.vlgmr.msra.gmra.mrb[2].mxu0 %vm445_vm0, %v533_v20  ;;  %2423 = vmatmul.mubr.msk.f32.gmra.mrb[4].mxu1 %vm445_vm0, %v567_v21  ;;  %v588_v63 = vld [vmem:[%s3198_s10 + $0x1c0] sm:$0xff]  ;;  %v555_v0 = vld [vmem:[%s3198_s10 + $0xb8] sm:$0xff]  ;;  %v589_v1 = vld [vmem:[%s3198_s10 + $0x1c8] sm:$0xff] }
  0xb4   : > { %2374 = vmatprep.mubr.msk.f32.mxu0 %vm445_vm0, %v534_v22  ;;  %2425 = vmatprep.mubr.msk.f32.mxu1 %vm445_vm0, %v568_v23  ;;  %v556_v2 = vld [vmem:[%s3198_s10 + $0xc0] sm:$0xff]  ;;  %v590_v3 = vld [vmem:[%s3198_s10 + $0x1d0] sm:$0xff]  ;;  %v557_v4 = vld [vmem:[%s3198_s10 + $0xc8] sm:$0xff] }
  0xb5   : > { %v591_v5 = vld [vmem:[%s3198_s10 + $0x1d8] sm:$0xff]  ;;  %v558_v6 = vld [vmem:[%s3198_s10 + $0xd0] sm:$0xff]  ;;  %v592_v7 = vld [vmem:[%s3198_s10 + $0x1e0] sm:$0xff] }
  0xb6   : > { %v559_v8 = vld [vmem:[%s3198_s10 + $0xd8] sm:$0xff]  ;;  %v593_v9 = vld [vmem:[%s3198_s10 + $0x1e8] sm:$0xff]  ;;  %v560_v10 = vld [vmem:[%s3198_s10 + $0xe0] sm:$0xff] }
  0xb7   : > { %2375 = vmatmul.mubr.msk.f32.gmra.mrb[4].mxu0 %vm445_vm0, %v535_v24  ;;  %2426 = vmatmul.mubr.msk.f32.gmra.mrb[6].mxu1 %vm445_vm0, %v569_v25  ;;  %v594_v11 = vld [vmem:[%s3198_s10 + $0x1f0] sm:$0xff]  ;;  %v561_v12 = vld [vmem:[%s3198_s10 + $0xe8] sm:$0xff]  ;;  %v595_v13 = vld [vmem:[%s3198_s10 + $0x1f8] sm:$0xff] }
  0xb8   : > { %2377 = vmatprep.mubr.msk.f32.mxu0 %vm445_vm0, %v536_v26  ;;  %2428 = vmatprep.mubr.msk.f32.mxu1 %vm445_vm0, %v570_v27  ;;  %v2201_v14 = vld [vmem:[%s3913_s5] ss:$0 sm:$0xff] }
  0xbb   : > { %2378 = vmatmul.mubr.msk.f32.gmra.mrb[6].mxu0 %vm445_vm0, %v537_v28  ;;  %2429 = vmatmul.mubr.msk.f32.gmra.mrb[8].mxu1 %vm445_vm0, %v571_v29 }
  0xbc   : > { %2380 = vmatprep.mubr.msk.f32.mxu0 %vm445_vm0, %v538_v30  ;;  %2431 = vmatprep.mubr.msk.f32.mxu1 %vm445_vm0, %v572_v31 }
  0xbf   : > { %2381 = vmatmul.mubr.msk.f32.gmra.mrb[8].mxu0 %vm445_vm0, %v539_v32  ;;  %2432 = vmatmul.mubr.msk.f32.gmra.mrb[10].mxu1 %vm445_vm0, %v573_v33 }
  0xc0   : > { %2383 = vmatprep.mubr.msk.f32.mxu0 %vm445_vm0, %v540_v34  ;;  %2434 = vmatprep.mubr.msk.f32.mxu1 %vm445_vm0, %v574_v35 }
  0xc3   : > { %2384 = vmatmul.mubr.msk.f32.gmra.mrb[10].mxu0 %vm445_vm0, %v541_v36  ;;  %2435 = vmatmul.mubr.msk.f32.gmra.mrb[12].mxu1 %vm445_vm0, %v575_v37 }
  0xc4   : > { %2386 = vmatprep.mubr.msk.f32.mxu0 %vm445_vm0, %v542_v38  ;;  %2437 = vmatprep.mubr.msk.f32.mxu1 %vm445_vm0, %v576_v39  ;;  %v3362_v39 = vld [vmem:[%s3914_s6] ss:$0 sm:$0xff] }
  0xc7   : > { %2387 = vmatmul.mubr.msk.f32.gmra.mrb[12].mxu0 %vm445_vm0, %v543_v40  ;;  %2438 = vmatmul.mubr.msk.f32.gmra.mrb[14].mxu1 %vm445_vm0, %v577_v41 }
  0xc8   : > { %2389 = vmatprep.mubr.msk.f32.mxu0 %vm445_vm0, %v544_v42  ;;  %2440 = vmatprep.mubr.msk.f32.mxu1 %vm445_vm0, %v578_v43 }
  0xcb   : > { %2390 = vmatmul.mubr.msk.f32.gmra.mrb[14].mxu0 %vm445_vm0, %v545_v44  ;;  %2441 = vmatmul.mubr.msk.f32.gmra.mrb[16].mxu1 %vm445_vm0, %v579_v45 }
  0xcc   : > { %2392 = vmatprep.mubr.msk.f32.mxu0 %vm445_vm0, %v546_v46  ;;  %2443 = vmatprep.mubr.msk.f32.mxu1 %vm445_vm0, %v580_v47 }
  0xcf   : > { %2393 = vmatmul.mubr.msk.f32.gmra.mrb[16].mxu0 %vm445_vm0, %v547_v48  ;;  %2444 = vmatmul.mubr.msk.f32.gmra.mrb[18].mxu1 %vm445_vm0, %v581_v49 }
  0xd0   : > { %2395 = vmatprep.mubr.msk.f32.mxu0 %vm445_vm0, %v548_v50  ;;  %2446 = vmatprep.mubr.msk.f32.mxu1 %vm445_vm0, %v582_v51 }
  0xd3   : > { %2396 = vmatmul.mubr.msk.f32.gmra.mrb[18].mxu0 %vm445_vm0, %v549_v52  ;;  %2447 = vmatmul.mubr.msk.f32.gmra.mrb[20].mxu1 %vm445_vm0, %v583_v53 }
  0xd4   : > { %2398 = vmatprep.mubr.msk.f32.mxu0 %vm445_vm0, %v550_v54  ;;  %2449 = vmatprep.mubr.msk.f32.mxu1 %vm445_vm0, %v584_v55 }
  0xd7   : > { %2399 = vmatmul.mubr.msk.f32.gmra.mrb[20].mxu0 %vm445_vm0, %v551_v56  ;;  %2450 = vmatmul.mubr.msk.f32.gmra.mrb[22].mxu1 %vm445_vm0, %v585_v57 }
  0xd8   : > { %2401 = vmatprep.mubr.msk.f32.mxu0 %vm445_vm0, %v552_v58  ;;  %2452 = vmatprep.mubr.msk.f32.mxu1 %vm445_vm0, %v586_v59 }
  0xdb   : > { %2402 = vmatmul.mubr.msk.f32.gmra.mrb[22].mxu0 %vm445_vm0, %v553_v60  ;;  %2453 = vmatmul.mubr.msk.f32.gmra.mrb[24].mxu1 %vm445_vm0, %v587_v61 }
  0xdc   : > { %2404 = vmatprep.mubr.msk.f32.mxu0 %vm445_vm0, %v554_v62  ;;  %2455 = vmatprep.mubr.msk.f32.mxu1 %vm445_vm0, %v588_v63 }
  0xdf   : > { %2405 = vmatmul.mubr.msk.f32.gmra.mrb[24].mxu0 %vm445_vm0, %v555_v0  ;;  %2456 = vmatmul.mubr.msk.f32.gmra.mrb[26].mxu1 %vm445_vm0, %v589_v1 }
  0xe0   : > { %2407 = vmatprep.mubr.msk.f32.mxu0 %vm445_vm0, %v556_v2  ;;  %2458 = vmatprep.mubr.msk.f32.mxu1 %vm445_vm0, %v590_v3 }
  0xe3   : > { %2408 = vmatmul.mubr.msk.f32.gmra.mrb[26].mxu0 %vm445_vm0, %v557_v4  ;;  %2459 = vmatmul.mubr.msk.f32.gmra.mrb[28].mxu1 %vm445_vm0, %v591_v5 }
  0xe4   : > { %2410 = vmatprep.mubr.msk.f32.mxu0 %vm445_vm0, %v558_v6  ;;  %2461 = vmatprep.mubr.msk.f32.mxu1 %vm445_vm0, %v592_v7 }
  0xe7   : > { %2411 = vmatmul.mubr.msk.f32.gmra.mrb[28].mxu0 %vm445_vm0, %v559_v8  ;;  %2462 = vmatmul.mubr.msk.f32.gmra.mrb[30].mxu1 %vm445_vm0, %v593_v9 }
  0xe8   : > { %2413 = vmatprep.mubr.msk.f32.mxu0 %vm445_vm0, %v560_v10  ;;  %2464 = vmatprep.mubr.msk.f32.mxu1 %vm445_vm0, %v594_v11 }
  0xeb   : > { %2414 = vmatmul.mubr.msk.f32.gmra.mrb[30].mxu0 %vm445_vm0, %v561_v12  ;;  %2465 = vmatmul.mubr.msk.f32.gmra.mrb[32].mxu1 %vm445_vm0, %v595_v13 }
 0x17e   : > { %v2362_v15 = vpop.f32.mrb[0].mxu0  ;;  %v2418_v18 = vpop.f32.mrb[0].mxu1 }
 0x17f   : > { %v3346_v16 = vadd.f32 %v2362_v15, %v2201_v14  ;;  %v518_v17 = vpop.f32.mrb[1].mxu0  ;;  %v1004_v20 = vpop.f32.mrb[1].mxu1 }
 0x180   : > { %v3348_v19 = vadd.f32 %v2201_v14, %v518_v17 }
 0x181   : > { %v1204_v21 = vadd.f32 %v2418_v18, %v3346_v16 }
 0x182   : > { %v1203_v22 = vadd.f32 %v1004_v20, %v3348_v19  ;;  %v2421_v23 = vpop.f32.mrb[2].mxu1 }
 0x183   : > { %2573 = vtanh.f32 %v1204_v21  ;;  %v1206_v24 = vadd.f32 %v2421_v23, %v3346_v16  ;;  %v1014_v25 = vpop.f32.mrb[3].mxu1 }
 0x184   : > { %2575 = vtanh.f32 %v1203_v22  ;;  %v1205_v26 = vadd.f32 %v1014_v25, %v3348_v19 }
 0x185   : > { %2577 = vtanh.f32 %v1206_v24 }
 0x186   : > { %v2373_v27 = vpop.f32.mrb[2].mxu0  ;;  %2579 = vtanh.f32 %v1205_v26  ;;  %v2424_v29 = vpop.f32.mrb[4].mxu1 }
 0x187   : > { %v1174_v28 = vadd.f32 %v2373_v27, %v3346_v16  ;;  %v854_v30 = vpop.f32.mrb[3].mxu0  ;;  %v1208_v31 = vadd.f32 %v2424_v29, %v3346_v16  ;;  %v1024_v33 = vpop.f32.mrb[5].mxu1 }
 0x188   : > { %v1173_v32 = vadd.f32 %v854_v30, %v3348_v19  ;;  %v1207_v34 = vadd.f32 %v1024_v33, %v3348_v19 }
 0x189   : > { %2581 = vtanh.f32 %v1174_v28 }
 0x18a   : > { %2583 = vtanh.f32 %v1208_v31  ;;  %v2376_v35 = vpop.f32.mrb[4].mxu0  ;;  %v2427_v37 = vpop.f32.mrb[6].mxu1 }
 0x18b   : > { %v1176_v36 = vadd.f32 %v2376_v35, %v3346_v16  ;;  %v864_v38 = vpop.f32.mrb[5].mxu0  ;;  %2585 = vtanh.f32 %v1173_v32  ;;  %v1210_v40 = vadd.f32 %v2427_v37, %v3346_v16  ;;  %v1034_v42 = vpop.f32.mrb[7].mxu1 }
 0x18c   : > { %v1175_v41 = vadd.f32 %v864_v38, %v3348_v19  ;;  %v1209_v44 = vadd.f32 %v1034_v42, %v3348_v19 }
 0x18d   : > { %v2574_v43 = vpop.eup %2573  ;;  %2587 = vtanh.f32 %v1176_v36 }
 0x18e   : > { %v2576_v45 = vpop.eup %2575  ;;  %v2379_v46 = vpop.f32.mrb[6].mxu0  ;;  %v1338_v47 = vmul.f32 %v2574_v43, %v3362_v39  ;;  %2589 = vtanh.f32 %v1210_v40 }
 0x18f   : > { %v1178_v48 = vadd.f32 %v2379_v46, %v3346_v16  ;;  %v2430_v49 = vpop.f32.mrb[8].mxu1  ;;  %v874_v50 = vpop.f32.mrb[7].mxu0  ;;  %v1337_v51 = vmul.f32 %v2576_v45, %v3362_v39  ;;  %2591 = vtanh.f32 %v1207_v34 }
 0x190   : > { %v2578_v52 = vpop.eup %2577  ;;  %v1212_v53 = vadd.f32 %v2430_v49, %v3346_v16  ;;  %v1177_v54 = vadd.f32 %v874_v50, %v3348_v19  ;;  %v1044_v55 = vpop.f32.mrb[9].mxu1  ;;  %v1464_v56 = vsel %vm445_vm0, %v1338_v47, 0.0  ;;  %2593 = vtanh.f32 %v1175_v41 }
 0x191   : > { %v2580_v57 = vpop.eup %2579  ;;  %v1211_v58 = vadd.f32 %v1044_v55, %v3348_v19  ;;  %1465 = vadd.xlane.f32.xlu1 %v1464_v56  ;;  %v1461_v59 = vsel %vm445_vm0, %v1337_v51, 0.0  ;;  %v1340_v60 = vmul.f32 %v2578_v52, %v3362_v39  ;;  %2595 = vtanh.f32 %v1209_v44 }
 0x192   : > { %v2382_v61 = vpop.f32.mrb[8].mxu0  ;;  %1462 = vadd.xlane.f32.xlu0 %v1461_v59  ;;  %v1339_v62 = vmul.f32 %v2580_v57, %v3362_v39  ;;  %v2433_v1 = vpop.f32.mrb[10].mxu1  ;;  %2597 = vtanh.f32 %v1178_v48 }
 0x193   : > { %v2582_v63 = vpop.eup %2581  ;;  %v1180_v0 = vadd.f32 %v2382_v61, %v3346_v16  ;;  %v884_v2 = vpop.f32.mrb[9].mxu0  ;;  %v3379_v4 = vadd.f32 %v2433_v1, %v3346_v16  ;;  %v1470_v7 = vsel %vm445_vm0, %v1340_v60, 0.0  ;;  %2599 = vtanh.f32 %v1177_v54 }
 0x194   : > { %v2584_v3 = vpop.eup %2583  ;;  %v1179_v5 = vadd.f32 %v884_v2, %v3348_v19  ;;  %v1054_v6 = vpop.f32.mrb[11].mxu1  ;;  %v1467_v9 = vsel %vm445_vm0, %v1339_v62, 0.0  ;;  %v1308_v11 = vmul.f32 %v2582_v63, %v3362_v39  ;;  %2601 = vtanh.f32 %v1212_v53 }
 0x195   : > { %v3384_v8 = vadd.f32 %v1054_v6, %v3348_v19  ;;  %1471 = vadd.xlane.f32.xlu1 %v1470_v7  ;;  %v1342_v10 = vmul.f32 %v2584_v3, %v3362_v39  ;;  %v2586_v12 = vpop.eup %2585  ;;  %2603 = vtanh.f32 %v1211_v58 }
 0x196   : > { %v2385_v13 = vpop.f32.mrb[10].mxu0  ;;  %1468 = vadd.xlane.f32.xlu0 %v1467_v9  ;;  %v2436_v17 = vpop.f32.mrb[12].mxu1  ;;  %v1374_v27 = vsel %vm445_vm0, %v1308_v11, 0.0  ;;  %v1307_v28 = vmul.f32 %v2586_v12, %v3362_v39  ;;  %2605 = vtanh.f32 %v1180_v0 }
 0x197   : > { %v2588_v14 = vpop.eup %2587  ;;  %v3390_v15 = vadd.f32 %v2385_v13, %v3346_v16  ;;  %v894_v18 = vpop.f32.mrb[11].mxu0  ;;  %v3393_v20 = vadd.f32 %v2436_v17, %v3346_v16  ;;  %v1476_v23 = vsel %vm445_vm0, %v1342_v10, 0.0  ;;  %2607 = vtanh.f32 %v1179_v5 }
 0x198   : > { %v3396_v21 = vadd.f32 %v894_v18, %v3348_v19  ;;  %v1064_v22 = vpop.f32.mrb[13].mxu1  ;;  %v1310_v24 = vmul.f32 %v2588_v14, %v3362_v39  ;;  %v2590_v25 = vpop.eup %2589  ;;  %v1371_v42 = vsel %vm445_vm0, %v1307_v28, 0.0  ;;  %2609 = vtanh.f32 %v3379_v4 }
 0x199   : > { %v3401_v26 = vadd.f32 %v1064_v22, %v3348_v19  ;;  %1477 = vadd.xlane.f32.xlu1 %v1476_v23  ;;  %v2592_v29 = vpop.eup %2591  ;;  %v1344_v38 = vmul.f32 %v2590_v25, %v3362_v39  ;;  %2611 = vtanh.f32 %v3384_v8 }
 0x19a   : > { %v2388_v30 = vpop.f32.mrb[12].mxu0  ;;  %1375 = vadd.xlane.f32.xlu0 %v1374_v27  ;;  %v2439_v32 = vpop.f32.mrb[14].mxu1  ;;  %v1380_v37 = vsel %vm445_vm0, %v1310_v24, 0.0  ;;  %v1341_v43 = vmul.f32 %v2592_v29, %v3362_v39  ;;  %2613 = vtanh.f32 %v3390_v15 }
 0x19b   : > { %v3406_v31 = vadd.f32 %v2388_v30, %v3346_v16  ;;  %v904_v33 = vpop.f32.mrb[13].mxu0  ;;  %v3409_v34 = vadd.f32 %v2439_v32, %v3346_v16  ;;  %v1074_v36 = vpop.f32.mrb[15].mxu1  ;;  %v1482_v53 = vsel %vm445_vm0, %v1344_v38, 0.0  ;;  %2615 = vtanh.f32 %v3396_v21 }
 0x19c   : > { %v3412_v35 = vadd.f32 %v904_v33, %v3348_v19  ;;  %v2594_v40 = vpop.eup %2593  ;;  %v3417_v41 = vadd.f32 %v1074_v36, %v3348_v19  ;;  %v1473_v57 = vsel %vm445_vm0, %v1341_v43, 0.0  ;;  %2617 = vtanh.f32 %v3393_v20 }
 0x19d   : > { %1381 = vadd.xlane.f32.xlu1 %v1380_v37  ;;  %v2596_v44 = vpop.eup %2595  ;;  %v1309_v54 = vmul.f32 %v2594_v40, %v3362_v39  ;;  %2619 = vtanh.f32 %v3401_v26 }
 0x19e   : > { %v2391_v45 = vpop.f32.mrb[14].mxu0  ;;  %1372 = vadd.xlane.f32.xlu0 %v1371_v42  ;;  %v2442_v47 = vpop.f32.mrb[16].mxu1  ;;  %v1343_v58 = vmul.f32 %v2596_v44, %v3362_v39  ;;  %2621 = vtanh.f32 %v3406_v31 }
 0x19f   : > { %v3422_v46 = vadd.f32 %v2391_v45, %v3346_v16  ;;  %v914_v48 = vpop.f32.mrb[15].mxu0  ;;  %v2598_v49 = vpop.eup %2597  ;;  %v3425_v50 = vadd.f32 %v2442_v47, %v3346_v16  ;;  %v1377_v3 = vsel %vm445_vm0, %v1309_v54, 0.0  ;;  %2623 = vtanh.f32 %v3412_v35 }
 0x1a0   : > { %v3428_v51 = vadd.f32 %v914_v48, %v3348_v19  ;;  %v1084_v52 = vpop.f32.mrb[17].mxu1  ;;  %v2600_v55 = vpop.eup %2599  ;;  %v1312_v4 = vmul.f32 %v2598_v49, %v3362_v39  ;;  %v1479_v7 = vsel %vm445_vm0, %v1343_v58, 0.0  ;;  %2625 = vtanh.f32 %v3409_v34 }
 0x1a1   : > { %v3433_v56 = vadd.f32 %v1084_v52, %v3348_v19  ;;  %1483 = vadd.xlane.f32.xlu1 %v1482_v53  ;;  %v2602_v63 = vpop.eup %2601  ;;  %v1311_v8 = vmul.f32 %v2600_v55, %v3362_v39  ;;  %2627 = vtanh.f32 %v3417_v41 }
 0x1a2   : > { %v2394_v59 = vpop.f32.mrb[16].mxu0  ;;  %1474 = vadd.xlane.f32.xlu0 %v1473_v57  ;;  %v2445_v61 = vpop.f32.mrb[18].mxu1  ;;  %v1386_v22 = vsel %vm445_vm0, %v1312_v4, 0.0  ;;  %v1346_v15 = vmul.f32 %v2602_v63, %v3362_v39  ;;  %2629 = vtanh.f32 %v3422_v46 }
 0x1a3   : > { %v3440_v60 = vadd.f32 %v2394_v59, %v3346_v16  ;;  %v924_v62 = vpop.f32.mrb[17].mxu0  ;;  %v3443_v0 = vadd.f32 %v2445_v61, %v3346_v16  ;;  %v1094_v2 = vpop.f32.mrb[19].mxu1  ;;  %v1383_v24 = vsel %vm445_vm0, %v1311_v8, 0.0  ;;  %2631 = vtanh.f32 %v3428_v51 }
 0x1a4   : > { %v3446_v1 = vadd.f32 %v924_v62, %v3348_v19  ;;  %v2604_v5 = vpop.eup %2603  ;;  %v3451_v6 = vadd.f32 %v1094_v2, %v3348_v19  ;;  %v1488_v38 = vsel %vm445_vm0, %v1346_v15, 0.0  ;;  %2633 = vtanh.f32 %v3425_v50 }
 0x1a5   : > { %1378 = vadd.xlane.f32.xlu1 %v1377_v3  ;;  %v2606_v13 = vpop.eup %2605  ;;  %v1345_v25 = vmul.f32 %v2604_v5, %v3362_v39  ;;  %2635 = vtanh.f32 %v3433_v56 }
 0x1a6   : > { %v2397_v9 = vpop.f32.mrb[18].mxu0  ;;  %1480 = vadd.xlane.f32.xlu0 %v1479_v7  ;;  %v2448_v11 = vpop.f32.mrb[20].mxu1  ;;  %v1314_v20 = vmul.f32 %v2606_v13, %v3362_v39  ;;  %2637 = vtanh.f32 %v3440_v60 }
 0x1a7   : > { %v3458_v10 = vadd.f32 %v2397_v9, %v3346_v16  ;;  %v934_v12 = vpop.f32.mrb[19].mxu0  ;;  %v3461_v14 = vadd.f32 %v2448_v11, %v3346_v16  ;;  %v1104_v18 = vpop.f32.mrb[21].mxu1  ;;  %v1485_v42 = vsel %vm445_vm0, %v1345_v25, 0.0 }
 0x1a8   : > { %v3464_v17 = vadd.f32 %v934_v12, %v3348_v19  ;;  %v2608_v23 = vpop.eup %2607  ;;  %v3469_v21 = vadd.f32 %v1104_v18, %v3348_v19  ;;  %v1392_v55 = vsel %vm445_vm0, %v1314_v20, 0.0  ;;  %2639 = vtanh.f32 %v3446_v1 }
 0x1a9   : > { %1387 = vadd.xlane.f32.xlu1 %v1386_v22  ;;  %v2610_v32 = vpop.eup %2609  ;;  %v1313_v43 = vmul.f32 %v2608_v23, %v3362_v39  ;;  %2641 = vtanh.f32 %v3443_v0 }
 0x1aa   : > { %v2400_v27 = vpop.f32.mrb[20].mxu0  ;;  %1384 = vadd.xlane.f32.xlu0 %v1383_v24  ;;  %v2451_v29 = vpop.f32.mrb[22].mxu1  ;;  %v1348_v31 = vmul.f32 %v2610_v32, %v3362_v39 }
 0x1ab   : > { %v3476_v28 = vadd.f32 %v2400_v27, %v3346_v16  ;;  %v944_v30 = vpop.f32.mrb[21].mxu0  ;;  %v3479_v33 = vadd.f32 %v2451_v29, %v3346_v16  ;;  %v1114_v37 = vpop.f32.mrb[23].mxu1  ;;  %v1389_v58 = vsel %vm445_vm0, %v1313_v43, 0.0 }
 0x1ac   : > { %v3482_v36 = vadd.f32 %v944_v30, %v3348_v19  ;;  %v2612_v40 = vpop.eup %2611  ;;  %v3487_v26 = vadd.f32 %v1114_v37, %v3348_v19  ;;  %v1494_v8 = vsel %vm445_vm0, %v1348_v31, 0.0  ;;  %2643 = vtanh.f32 %v3451_v6 }
 0x1ad   : > { %1489 = vadd.xlane.f32.xlu1 %v1488_v38  ;;  %v2614_v49 = vpop.eup %2613  ;;  %v1347_v59 = vmul.f32 %v2612_v40, %v3362_v39  ;;  %2645 = vtanh.f32 %v3458_v10 }
 0x1ae   : > { %v2403_v44 = vpop.f32.mrb[22].mxu0  ;;  %1486 = vadd.xlane.f32.xlu0 %v1485_v42  ;;  %v2454_v47 = vpop.f32.mrb[24].mxu1  ;;  %v1316_v34 = vmul.f32 %v2614_v49, %v3362_v39 }
 0x1af   : > { %v3494_v45 = vadd.f32 %v2403_v44, %v3346_v16  ;;  %v954_v48 = vpop.f32.mrb[23].mxu0  ;;  %v3497_v52 = vadd.f32 %v2454_v47, %v3346_v16  ;;  %v1124_v54 = vpop.f32.mrb[25].mxu1  ;;  %v1491_v11 = vsel %vm445_vm0, %v1347_v59, 0.0 }
 0x1b0   : > { %v3500_v53 = vadd.f32 %v954_v48, %v3348_v19  ;;  %v2616_v57 = vpop.eup %2615  ;;  %v3505_v35 = vadd.f32 %v1124_v54, %v3348_v19  ;;  %v1398_v29 = vsel %vm445_vm0, %v1316_v34, 0.0  ;;  %2647 = vtanh.f32 %v3464_v17 }
 0x1b1   : > { %1393 = vadd.xlane.f32.xlu1 %v1392_v55  ;;  %v2618_v3 = vpop.eup %2617  ;;  %v1315_v12 = vmul.f32 %v2616_v57, %v3362_v39  ;;  %2649 = vtanh.f32 %v3461_v14 }
 0x1b2   : > { %v2406_v61 = vpop.f32.mrb[24].mxu0  ;;  %1390 = vadd.xlane.f32.xlu0 %v1389_v58  ;;  %v2457_v63 = vpop.f32.mrb[26].mxu1  ;;  %v1350_v46 = vmul.f32 %v2618_v3, %v3362_v39 }
 0x1b3   : > { %v3512_v62 = vadd.f32 %v2406_v61, %v3346_v16  ;;  %v964_v2 = vpop.f32.mrb[25].mxu0  ;;  %v3515_v4 = vadd.f32 %v2457_v63, %v3346_v16  ;;  %v1134_v7 = vpop.f32.mrb[27].mxu1  ;;  %v1395_v32 = vsel %vm445_vm0, %v1315_v12, 0.0 }
 0x1b4   : > { %v3518_v5 = vadd.f32 %v964_v2, %v3348_v19  ;;  %v2620_v9 = vpop.eup %2619  ;;  %v3523_v41 = vadd.f32 %v1134_v7, %v3348_v19  ;;  %v1500_v49 = vsel %vm445_vm0, %v1350_v46, 0.0  ;;  %2651 = vtanh.f32 %v3469_v21 }
 0x1b5   : > { %1495 = vadd.xlane.f32.xlu1 %v1494_v8  ;;  %v2622_v23 = vpop.eup %2621  ;;  %v1349_v37 = vmul.f32 %v2620_v9, %v3362_v39  ;;  %2653 = vtanh.f32 %v3476_v28 }
 0x1b6   : > { %v2409_v13 = vpop.f32.mrb[26].mxu0  ;;  %1492 = vadd.xlane.f32.xlu0 %v1491_v11  ;;  %v2460_v22 = vpop.f32.mrb[28].mxu1  ;;  %v1318_v50 = vmul.f32 %v2622_v23, %v3362_v39 }
 0x1b7   : > { %v3530_v18 = vadd.f32 %v2409_v13, %v3346_v16  ;;  %v974_v15 = vpop.f32.mrb[27].mxu0  ;;  %v3533_v24 = vadd.f32 %v2460_v22, %v3346_v16  ;;  %v1144_v27 = vpop.f32.mrb[29].mxu1  ;;  %v1497_v55 = vsel %vm445_vm0, %v1349_v37, 0.0 }
 0x1b8   : > { %v3536_v25 = vadd.f32 %v974_v15, %v3348_v19  ;;  %v2624_v30 = vpop.eup %2623  ;;  %v3541_v51 = vadd.f32 %v1144_v27, %v3348_v19  ;;  %v1404_v8 = vsel %vm445_vm0, %v1318_v50, 0.0  ;;  %2655 = vtanh.f32 %v3482_v36 }
 0x1b9   : > { %1399 = vadd.xlane.f32.xlu1 %v1398_v29  ;;  %v2626_v43 = vpop.eup %2625  ;;  %v1317_v31 = vmul.f32 %v2624_v30, %v3362_v39  ;;  %2657 = vtanh.f32 %v3479_v33 }
 0x1ba   : > { %v2412_v38 = vpop.f32.mrb[28].mxu0  ;;  %1396 = vadd.xlane.f32.xlu0 %v1395_v32  ;;  %v2463_v40 = vpop.f32.mrb[30].mxu1  ;;  %v1352_v60 = vmul.f32 %v2626_v43, %v3362_v39 }
 0x1bb   : > { %v3548_v20 = vadd.f32 %v2412_v38, %v3346_v16  ;;  %v984_v42 = vpop.f32.mrb[29].mxu0  ;;  %v3551_v44 = vadd.f32 %v2463_v40, %v3346_v16  ;;  %v1154_v48 = vpop.f32.mrb[31].mxu1  ;;  %v1401_v9 = vsel %vm445_vm0, %v1317_v31, 0.0 }
 0x1bc   : > { %v3554_v47 = vadd.f32 %v984_v42, %v3348_v19  ;;  %v2628_v54 = vpop.eup %2627  ;;  %v3559_v56 = vadd.f32 %v1154_v48, %v3348_v19  ;;  %v1506_v12 = vsel %vm445_vm0, %v1352_v60, 0.0  ;;  %2659 = vtanh.f32 %v3487_v26 }
 0x1bd   : > { %1501 = vadd.xlane.f32.xlu1 %v1500_v49  ;;  %v2630_v63 = vpop.eup %2629  ;;  %v1351_v11 = vmul.f32 %v2628_v54, %v3362_v39  ;;  %2661 = vtanh.f32 %v3494_v45 }
 0x1be   : > { %v2415_v57 = vpop.f32.mrb[30].mxu0  ;;  %1498 = vadd.xlane.f32.xlu0 %v1497_v55  ;;  %v2466_v59 = vpop.f32.mrb[32].mxu1  ;;  %v1320_v13 = vmul.f32 %v2630_v63, %v3362_v39 }
 0x1bf   : > { %v3566_v58 = vadd.f32 %v2415_v57, %v3346_v16  ;;  %v994_v61 = vpop.f32.mrb[31].mxu0  ;;  %v3569_v2 = vadd.f32 %v2466_v59, %v3346_v16  ;;  %v1164_v7 = vpop.f32.mrb[33].mxu1 }
 0x1c0   : > { %v3572_v3 = vadd.f32 %v994_v61, %v3348_v19  ;;  %v2632_v34 = vpop.eup %2631  ;;  %v3577_v1 = vadd.f32 %v1164_v7, %v3348_v19  ;;  %v1503_v19 = vsel %vm445_vm0, %v1351_v11, 0.0  ;;  %v1410_v0 = vsel %vm445_vm0, %v1320_v13, 0.0 }
 0x1c1   : > { %1405 = vadd.xlane.f32.xlu1 %v1404_v8  ;;  %v2634_v16 = vpop.eup %2633  ;;  %v1319_v15 = vmul.f32 %v2632_v34, %v3362_v39  ;;  %2663 = vtanh.f32 %v3500_v53 }
 0x1c2   : > { %1402 = vadd.xlane.f32.xlu0 %v1401_v9  ;;  %v2636_v22 = vpop.eup %2635  ;;  %v1354_v6 = vmul.f32 %v2634_v16, %v3362_v39  ;;  %2665 = vtanh.f32 %v3497_v52 }
 0x1c3   : > { %v2638_v23 = vpop.eup %2637  ;;  %v1407_v29 = vsel %vm445_vm0, %v1319_v15, 0.0  ;;  %v1353_v46 = vmul.f32 %v2636_v22, %v3362_v39  ;;  %2667 = vtanh.f32 %v3505_v35 }
 0x1c4   : > { %v2640_v27 = vpop.eup %2639  ;;  %v1512_v10 = vsel %vm445_vm0, %v1354_v6, 0.0  ;;  %v1322_v30 = vmul.f32 %v2638_v23, %v3362_v39  ;;  %2669 = vtanh.f32 %v3512_v62 }
 0x1c5   : > { %1507 = vadd.xlane.f32.xlu1 %v1506_v12  ;;  %v2642_v17 = vpop.eup %2641  ;;  %v1509_v32 = vsel %vm445_vm0, %v1353_v46, 0.0  ;;  %v1321_v37 = vmul.f32 %v2640_v27, %v3362_v39  ;;  %2671 = vtanh.f32 %v3518_v5 }
 0x1c6   : > { %1504 = vadd.xlane.f32.xlu0 %v1503_v19  ;;  %v2644_v38 = vpop.eup %2643  ;;  %v1416_v14 = vsel %vm445_vm0, %v1322_v30, 0.0  ;;  %v1356_v21 = vmul.f32 %v2642_v17, %v3362_v39  ;;  %2673 = vtanh.f32 %v3515_v4 }
 0x1c7   : > { %v2646_v40 = vpop.eup %2645  ;;  %v1413_v42 = vsel %vm445_vm0, %v1321_v37, 0.0  ;;  %v1355_v43 = vmul.f32 %v2644_v38, %v3362_v39  ;;  %2675 = vtanh.f32 %v3523_v41 }
 0x1c8   : > { %v2648_v48 = vpop.eup %2647  ;;  %v1518_v28 = vsel %vm445_vm0, %v1356_v21, 0.0  ;;  %v1324_v36 = vmul.f32 %v2646_v40, %v3362_v39  ;;  %2677 = vtanh.f32 %v3530_v18 }
 0x1c9   : > { %1411 = vadd.xlane.f32.xlu1 %v1410_v0  ;;  %v2650_v49 = vpop.eup %2649  ;;  %v1515_v50 = vsel %vm445_vm0, %v1355_v43, 0.0  ;;  %v1323_v54 = vmul.f32 %v2648_v48, %v3362_v39  ;;  %2679 = vtanh.f32 %v3536_v25 }
 0x1ca   : > { %1408 = vadd.xlane.f32.xlu0 %v1407_v29  ;;  %v2652_v55 = vpop.eup %2651  ;;  %v1422_v33 = vsel %vm445_vm0, %v1324_v36, 0.0  ;;  %v1358_v26 = vmul.f32 %v2650_v49, %v3362_v39  ;;  %2681 = vtanh.f32 %v3533_v24 }
 0x1cb   : > { %v2654_v31 = vpop.eup %2653  ;;  %v1419_v57 = vsel %vm445_vm0, %v1323_v54, 0.0  ;;  %v1357_v59 = vmul.f32 %v2652_v55, %v3362_v39  ;;  %2683 = vtanh.f32 %v3541_v51 }
 0x1cc   : > { %v2656_v61 = vpop.eup %2655  ;;  %v1524_v45 = vsel %vm445_vm0, %v1358_v26, 0.0  ;;  %v1326_v53 = vmul.f32 %v2654_v31, %v3362_v39  ;;  %2685 = vtanh.f32 %v3548_v20 }
 0x1cd   : > { %1513 = vadd.xlane.f32.xlu1 %v1512_v10  ;;  %v2658_v63 = vpop.eup %2657  ;;  %v1521_v7 = vsel %vm445_vm0, %v1357_v59, 0.0  ;;  %v1325_v8 = vmul.f32 %v2656_v61, %v3362_v39  ;;  %2687 = vtanh.f32 %v3554_v47 }
 0x1ce   : > { %1510 = vadd.xlane.f32.xlu0 %v1509_v32  ;;  %v2660_v60 = vpop.eup %2659  ;;  %v1428_v52 = vsel %vm445_vm0, %v1326_v53, 0.0  ;;  %v1360_v35 = vmul.f32 %v2658_v63, %v3362_v39  ;;  %2689 = vtanh.f32 %v3566_v58 }
 0x1cf   : > { %v2662_v34 = vpop.eup %2661  ;;  %v1425_v9 = vsel %vm445_vm0, %v1325_v8, 0.0  ;;  %v1359_v11 = vmul.f32 %v2660_v60, %v3362_v39  ;;  %2691 = vtanh.f32 %v3572_v3 }
 0x1d0   : > { %v2664_v16 = vpop.eup %2663  ;;  %v1530_v62 = vsel %vm445_vm0, %v1360_v35, 0.0  ;;  %v1328_v5 = vmul.f32 %v2662_v34, %v3362_v39  ;;  %2693 = vtanh.f32 %v3551_v44 }
 0x1d1   : > { %1417 = vadd.xlane.f32.xlu1 %v1416_v14  ;;  %v2666_v12 = vpop.eup %2665  ;;  %v1527_v13 = vsel %vm445_vm0, %v1359_v11, 0.0  ;;  %v1327_v22 = vmul.f32 %v2664_v16, %v3362_v39  ;;  %2695 = vtanh.f32 %v3559_v56 }
 0x1d2   : > { %1414 = vadd.xlane.f32.xlu0 %v1413_v42  ;;  %v2668_v19 = vpop.eup %2667  ;;  %v1434_v4 = vsel %vm445_vm0, %v1328_v5, 0.0  ;;  %v1362_v41 = vmul.f32 %v2666_v12, %v3362_v39  ;;  %2697 = vtanh.f32 %v3569_v2 }
 0x1d3   : > { %v2670_v15 = vpop.eup %2669  ;;  %v1431_v23 = vsel %vm445_vm0, %v1327_v22, 0.0  ;;  %v1361_v0 = vmul.f32 %v2668_v19, %v3362_v39  ;;  %2699 = vtanh.f32 %v3577_v1 }
 0x1d4   : > { %v2672_v6 = vpop.eup %2671  ;;  %v1536_v18 = vsel %vm445_vm0, %v1362_v41, 0.0  ;;  %v1330_v25 = vmul.f32 %v2670_v15, %v3362_v39 }
 0x1d5   : > { %1519 = vadd.xlane.f32.xlu1 %v1518_v28  ;;  %v2674_v27 = vpop.eup %2673  ;;  %v1533_v29 = vsel %vm445_vm0, %v1361_v0, 0.0  ;;  %v1329_v46 = vmul.f32 %v2672_v6, %v3362_v39 }
 0x1d6   : > { %1516 = vadd.xlane.f32.xlu0 %v1515_v50  ;;  %v2676_v10 = vpop.eup %2675  ;;  %v1440_v24 = vsel %vm445_vm0, %v1330_v25, 0.0  ;;  %v1364_v51 = vmul.f32 %v2674_v27, %v3362_v39 }
 0x1d7   : > { %v2678_v30 = vpop.eup %2677  ;;  %v1437_v17 = vsel %vm445_vm0, %v1329_v46, 0.0  ;;  %v1363_v32 = vmul.f32 %v2676_v10, %v3362_v39 }
 0x1d8   : > { %v2680_v37 = vpop.eup %2679  ;;  %v1542_v20 = vsel %vm445_vm0, %v1364_v51, 0.0  ;;  %v1332_v47 = vmul.f32 %v2678_v30, %v3362_v39 }
 0x1d9   : > { %1423 = vadd.xlane.f32.xlu1 %v1422_v33  ;;  %v2682_v38 = vpop.eup %2681  ;;  %v1539_v14 = vsel %vm445_vm0, %v1363_v32, 0.0  ;;  %v1331_v21 = vmul.f32 %v2680_v37, %v3362_v39 }
 0x1da   : > { %1420 = vadd.xlane.f32.xlu0 %v1419_v57  ;;  %v2684_v40 = vpop.eup %2683  ;;  %v1446_v58 = vsel %vm445_vm0, %v1332_v47, 0.0  ;;  %v1366_v3 = vmul.f32 %v2682_v38, %v3362_v39 }
 0x1db   : > { %v2686_v42 = vpop.eup %2685  ;;  %v1443_v43 = vsel %vm445_vm0, %v1331_v21, 0.0  ;;  %v1365_v48 = vmul.f32 %v2684_v40, %v3362_v39 }
 0x1dc   : > { %v2688_v28 = vpop.eup %2687  ;;  %v1548_v44 = vsel %vm445_vm0, %v1366_v3, 0.0  ;;  %v1334_v56 = vmul.f32 %v2686_v42, %v3362_v39 }
 0x1dd   : > { %1525 = vadd.xlane.f32.xlu1 %v1524_v45  ;;  %v2690_v36 = vpop.eup %2689  ;;  %v1545_v49 = vsel %vm445_vm0, %v1365_v48, 0.0  ;;  %v1333_v50 = vmul.f32 %v2688_v28, %v3362_v39 }
 0x1de   : > { %1522 = vadd.xlane.f32.xlu0 %v1521_v7  ;;  %v2692_v54 = vpop.eup %2691  ;;  %v1452_v55 = vsel %vm445_vm0, %v1334_v56, 0.0  ;;  %v1336_v33 = vmul.f32 %v2690_v36, %v3362_v39 }
 0x1df   : > { %v2694_v26 = vpop.eup %2693  ;;  %v1449_v2 = vsel %vm445_vm0, %v1333_v50, 0.0  ;;  %v1335_v1 = vmul.f32 %v2692_v54, %v3362_v39 }
 0x1e0   : > { %v2696_v31 = vpop.eup %2695  ;;  %v1458_v57 = vsel %vm445_vm0, %v1336_v33, 0.0  ;;  %v1368_v59 = vmul.f32 %v2694_v26, %v3362_v39 }
 0x1e1   : > { %1429 = vadd.xlane.f32.xlu1 %v1428_v52  ;;  %v2698_v61 = vpop.eup %2697  ;;  %v1455_v45 = vsel %vm445_vm0, %v1335_v1, 0.0  ;;  %v1367_v53 = vmul.f32 %v2696_v31, %v3362_v39 }
 0x1e2   : > { %1426 = vadd.xlane.f32.xlu0 %v1425_v9  ;;  %v2700_v63 = vpop.eup %2699  ;;  %v1554_v7 = vsel %vm445_vm0, %v1368_v59, 0.0  ;;  %v1370_v8 = vmul.f32 %v2698_v61, %v3362_v39  ;;  %v1627_v9 = vlaneseq }
 0x1e3   : > { %v1551_v60 = vsel %vm445_vm0, %v1367_v53, 0.0  ;;  %v1369_v52 = vmul.f32 %v2700_v63, %v3362_v39 }
 0x1e4   : > { %v1560_v35 = vsel %vm445_vm0, %v1370_v8, 0.0  ;;  %v1628_v11 = vand.u32 127, %v1627_v9  ;;  %v1630_v16 = vshrl.u32 %v1627_v9, 7 }
 0x1e5   : > { %1531 = vadd.xlane.f32.xlu1 %v1530_v62  ;;  %v1557_v34 = vsel %vm445_vm0, %v1369_v52, 0.0 }
 0x1e6   : > { %1528 = vadd.xlane.f32.xlu0 %v1527_v13  ;;  %v1633_v62 = vadd.s32 4294967288, %v1628_v11  ;;  %v3687_v12 = vsub.s32 %v1628_v11, %v1630_v16 }
 0x1e8   : > { %v3685_v5 = vsub.s32 %v1633_v62, %v1630_v16 }
 0x1e9   : > { %1435 = vadd.xlane.f32.xlu1 %v1434_v4 }
 0x1ea   : > { %1432 = vadd.xlane.f32.xlu0 %v1431_v23 }
 0x1ed   : > { %1537 = vadd.xlane.f32.xlu1 %v1536_v18 }
 0x1ee   : > { %1534 = vadd.xlane.f32.xlu0 %v1533_v29 }
 0x1f1   : > { %1441 = vadd.xlane.f32.xlu1 %v1440_v24 }
 0x1f2   : > { %1438 = vadd.xlane.f32.xlu0 %v1437_v17 }
 0x1f5   : > { %1543 = vadd.xlane.f32.xlu1 %v1542_v20 }
 0x1f6   : > { %1540 = vadd.xlane.f32.xlu0 %v1539_v14 }
 0x1f9   : > { %1447 = vadd.xlane.f32.xlu1 %v1446_v58 }
 0x1fa   : > { %1444 = vadd.xlane.f32.xlu0 %v1443_v43 }
 0x1fd   : > { %1549 = vadd.xlane.f32.xlu1 %v1548_v44 }
 0x1fe   : > { %1546 = vadd.xlane.f32.xlu0 %v1545_v49 }
 0x201   : > { %1453 = vadd.xlane.f32.xlu1 %v1452_v55 }
 0x202   : > { %1450 = vadd.xlane.f32.xlu0 %v1449_v2 }
 0x205   : > { %1459 = vadd.xlane.f32.xlu1 %v1458_v57 }
 0x206   : > { %1456 = vadd.xlane.f32.xlu0 %v1455_v45 }
 0x209   : > { %1555 = vadd.xlane.f32.xlu1 %v1554_v7 }
 0x20a   : > { %1552 = vadd.xlane.f32.xlu0 %v1551_v60 }
 0x20d   : > { %1561 = vadd.xlane.f32.xlu1 %v1560_v35 }
 0x20e   : > { %1558 = vadd.xlane.f32.xlu0 %v1557_v34 }
 0x21e   : > { %v1466_v13 = vpop.xlane.xlu1 %1465 }
 0x21f   : > { %v1773_v22 = vrot.slane %v1466_v13, %v3685_v5  ;;  %v1463_v39 = vpop.xlane.xlu0 %1462 }
 0x220   : > { %v1769_v19 = vrot.slane %v1463_v39, %v3687_v12 }
 0x222   : > { %v3692_v4 = vsel %vm1638_vm1, %v1773_v22, %v1769_v19  ;;  %v1472_v41 = vpop.xlane.xlu1 %1471 }
 0x223   : > { %v1469_v15 = vpop.xlane.xlu0 %1468  ;;  %v1782_v58 = vrot.slane %v1472_v41, %v3685_v5 }
 0x224   : > { %v1778_v3 = vrot.slane %v1469_v15, %v3687_v12 }
 0x226   : > { %v1478_v23 = vpop.xlane.xlu1 %1477  ;;  %v1783_v36 = vsel %vm1638_vm1, %v1782_v58, %v1778_v3 }
 0x227   : > { %v3694_v0 = vpop.xlane.xlu0 %1375  ;;  %v1791_v28 = vrot.slane %v1478_v23, %v3685_v5 }
 0x228   : > { %v1637_v55 = vrot.slane %v3694_v0, %v3685_v5 }
 0x22a   : > { %v1382_v6 = vpop.xlane.xlu1 %1381 }
 0x22b   : > { %v3696_v18 = vpop.xlane.xlu0 %1372  ;;  %v1647_v61 = vrot.slane %v1382_v6, %v3685_v5 }
 0x22c   : > { %v1632_v45 = vrot.slane %v3696_v18, %v3687_v12 }
 0x22e   : > { %v1484_v25 = vpop.xlane.xlu1 %1483 }
 0x22f   : > { %v1475_v27 = vpop.xlane.xlu0 %1474  ;;  %v1800_v44 = vrot.slane %v1484_v25, %v3685_v5 }
 0x230   : > { %v1787_v43 = vrot.slane %v1475_v27, %v3687_v12 }
 0x232   : > { %v1379_v29 = vpop.xlane.xlu1 %1378  ;;  %v1792_v33 = vsel %vm1638_vm1, %v1791_v28, %v1787_v43 }
 0x233   : > { %v1481_v46 = vpop.xlane.xlu0 %1480  ;;  %v1643_v26 = vrot.slane %v1379_v29, %v3687_v12  ;;  %v1940_v8 = vsel %vm1919_vm2, %v1792_v33, %v1783_v36 }
 0x234   : > { %v1796_v48 = vrot.slane %v1481_v46, %v3687_v12 }
 0x235   : > { %v1648_v9 = vsel %vm1638_vm1, %v1647_v61, %v1643_v26 }
 0x236   : > { %v1388_v10 = vpop.xlane.xlu1 %1387  ;;  %v1801_v2 = vsel %vm1638_vm1, %v1800_v44, %v1796_v48 }
 0x237   : > { %v1385_v24 = vpop.xlane.xlu0 %1384  ;;  %v1656_v1 = vrot.slane %v1388_v10, %v3685_v5  ;;  %v1941_v11 = vsel %vm1921_vm3, %v1801_v2, %v1940_v8  ;;  %v1639_v10 = vsel %vm1638_vm1, %v1637_v55, %v1632_v45 }
 0x238   : > { %v1652_v31 = vrot.slane %v1385_v24, %v3687_v12 }
 0x23a   : > { %v1490_v51 = vpop.xlane.xlu1 %1489  ;;  %v1657_v13 = vsel %vm1638_vm1, %v1656_v1, %v1652_v31 }
 0x23b   : > { %v1487_v30 = vpop.xlane.xlu0 %1486  ;;  %v1809_v49 = vrot.slane %v1490_v51, %v3685_v5 }
 0x23c   : > { %v1805_v50 = vrot.slane %v1487_v30, %v3687_v12 }
 0x23e   : > { %v3698_v17 = vpop.xlane.xlu1 %1393  ;;  %v1810_v60 = vsel %vm1638_vm1, %v1809_v49, %v1805_v50 }
 0x23f   : > { %v3700_v32 = vpop.xlane.xlu0 %1390  ;;  %v1665_v16 = vrot.slane %v3698_v17, %v3685_v5  ;;  %v1942_v41 = vsel %vm1923_vm4, %v1810_v60, %v1941_v11  ;;  %v1920_v17 = vsel %vm1919_vm2, %v1648_v9, %v1639_v10 }
 0x240   : > { %v1661_v62 = vrot.slane %v3700_v32, %v3687_v12 }
 0x242   : > { %v1496_v37 = vpop.xlane.xlu1 %1495  ;;  %v1666_v24 = vsel %vm1638_vm1, %v1665_v16, %v1661_v62 }
 0x243   : > { %v1493_v20 = vpop.xlane.xlu0 %1492  ;;  %v1818_v57 = vrot.slane %v1496_v37, %v3685_v5 }
 0x244   : > { %v1814_v59 = vrot.slane %v1493_v20, %v3687_v12  ;;  %v1922_v20 = vsel %vm1921_vm3, %v1657_v13, %v1920_v17 }
 0x246   : > { %v3702_v47 = vpop.xlane.xlu1 %1399  ;;  %v1819_v22 = vsel %vm1638_vm1, %v1818_v57, %v1814_v59 }
 0x247   : > { %v3704_v38 = vpop.xlane.xlu0 %1396  ;;  %v1674_v39 = vrot.slane %v3702_v47, %v3685_v5  ;;  %v1943_v51 = vsel %vm1925_vm5, %v1819_v22, %v1942_v41 }
 0x248   : > { %v1670_v19 = vrot.slane %v3704_v38, %v3687_v12 }
 0x24a   : > { %v1502_v14 = vpop.xlane.xlu1 %1501  ;;  %v1675_v32 = vsel %vm1638_vm1, %v1674_v39, %v1670_v19 }
 0x24b   : > { %v1499_v21 = vpop.xlane.xlu0 %1498  ;;  %v1827_v53 = vrot.slane %v1502_v14, %v3685_v5 }
 0x24c   : > { %v1823_v63 = vrot.slane %v1499_v21, %v3687_v12 }
 0x24e   : > { %v3706_v40 = vpop.xlane.xlu1 %1405  ;;  %v1828_v15 = vsel %vm1638_vm1, %v1827_v53, %v1823_v63 }
 0x24f   : > { %v3710_v42 = vpop.xlane.xlu0 %1402  ;;  %v1683_v23 = vrot.slane %v3706_v40, %v3685_v5  ;;  %v1944_v37 = vsel %vm1927_vm6, %v1828_v15, %v1943_v51  ;;  %v1924_v40 = vsel %vm1923_vm4, %v1666_v24, %v1922_v20 }
 0x250   : > { %v1679_v0 = vrot.slane %v3710_v42, %v3687_v12  ;;  %v1926_v48 = vsel %vm1925_vm5, %v1675_v32, %v1924_v40 }
 0x252   : > { %v1508_v56 = vpop.xlane.xlu1 %1507  ;;  %v1684_v47 = vsel %vm1638_vm1, %v1683_v23, %v1679_v0 }
 0x253   : > { %v1505_v54 = vpop.xlane.xlu0 %1504  ;;  %v1836_v52 = vrot.slane %v1508_v56, %v3685_v5  ;;  %v1928_v44 = vsel %vm1927_vm6, %v1684_v47, %v1926_v48 }
 0x254   : > { %v1832_v35 = vrot.slane %v1505_v54, %v3687_v12 }
 0x256   : > { %v1412_v7 = vpop.xlane.xlu1 %1411  ;;  %v1837_v18 = vsel %vm1638_vm1, %v1836_v52, %v1832_v35 }
 0x257   : > { %v1409_v34 = vpop.xlane.xlu0 %1408  ;;  %v1692_v25 = vrot.slane %v1412_v7, %v3685_v5  ;;  %v1945_v38 = vsel %vm1929_vm7, %v1837_v18, %v1944_v37 }
 0x258   : > { %v1688_v27 = vrot.slane %v1409_v34, %v3687_v12 }
 0x25a   : > { %v1514_v6 = vpop.xlane.xlu1 %1513  ;;  %v1693_v58 = vsel %vm1638_vm1, %v1692_v25, %v1688_v27 }
 0x25b   : > { %v1845_v29 = vrot.slane %v1514_v6, %v3685_v5  ;;  %v1511_v46 = vpop.xlane.xlu0 %1510  ;;  %v1930_v56 = vsel %vm1929_vm7, %v1693_v58, %v1928_v44 }
 0x25c   : > { %v1841_v30 = vrot.slane %v1511_v46, %v3687_v12 }
 0x25e   : > { %v1846_v14 = vsel %vm1638_vm1, %v1845_v29, %v1841_v30  ;;  %v1418_v21 = vpop.xlane.xlu1 %1417 }
 0x25f   : > { %v1946_v3 = vsel %vm1931_vm8, %v1846_v14, %v1945_v38  ;;  %v1701_v42 = vrot.slane %v1418_v21, %v3685_v5  ;;  %v1415_v43 = vpop.xlane.xlu0 %1414 }
 0x260   : > { %1961 = vst.msk [vmem:[#allocation2 + $0x10] sm:$0xff] %vm1958_vm9, %v1946_v3  ;;  %v1697_v28 = vrot.slane %v1415_v43, %v3687_v12 }
 0x262   : > { %v1702_v36 = vsel %vm1638_vm1, %v1701_v42, %v1697_v28  ;;  %v1520_v49 = vpop.xlane.xlu1 %1519 }
 0x263   : > { %v1932_v50 = vsel %vm1931_vm8, %v1702_v36, %v1930_v56  ;;  %v1517_v54 = vpop.xlane.xlu0 %1516  ;;  %v1854_v45 = vrot.slane %v1520_v49, %v3685_v5 }
 0x264   : > { %1959 = vst.msk [vmem:[#allocation2] sm:$0xff] %vm1958_vm9, %v1932_v50  ;;  %v1850_v53 = vrot.slane %v1517_v54, %v3687_v12 }
 0x266   : > { %v3782_v55 = vpop.xlane.xlu1 %1423  ;;  %v1855_v35 = vsel %vm1638_vm1, %v1854_v45, %v1850_v53 }
 0x267   : > { %v1421_v33 = vpop.xlane.xlu0 %1420  ;;  %v1710_v14 = vrot.slane %v3782_v55, %v3685_v5 }
 0x268   : > { %v1706_v21 = vrot.slane %v1421_v33, %v3687_v12 }
 0x26a   : > { %v1526_v26 = vpop.xlane.xlu1 %1525  ;;  %v1711_v54 = vsel %vm1638_vm1, %v1710_v14, %v1706_v21 }
 0x26b   : > { %v1523_v2 = vpop.xlane.xlu0 %1522  ;;  %v1963_v1 = vld [vmem:[#allocation2] sm:$0xff]  ;;  %v1863_v57 = vrot.slane %v1526_v26, %v3685_v5 }
 0x26c   : > { %1967 = vxpose.xlu0.b32.start [1/4] (short) (narrow) %v1963_v1, 16  ;;  %v1859_v59 = vrot.slane %v1523_v2, %v3687_v12 }
 0x26e   : > { %v1430_v31 = vpop.xlane.xlu1 %1429  ;;  %v1864_v7 = vsel %vm1638_vm1, %v1863_v57, %v1859_v59 }
 0x26f   : > { %v1427_v61 = vpop.xlane.xlu0 %1426  ;;  %v1947_v34 = vsel %vm1919_vm2, %v1864_v7, %v1855_v35  ;;  %v1719_v30 = vrot.slane %v1430_v31, %v3685_v5 }
 0x270   : > { %v1715_v17 = vrot.slane %v1427_v61, %v3687_v12 }
 0x272   : > { %v1532_v63 = vpop.xlane.xlu1 %1531  ;;  %v1720_v28 = vsel %vm1638_vm1, %v1719_v30, %v1715_v17 }
 0x273   : > { %v1872_v8 = vrot.slane %v1532_v63, %v3685_v5  ;;  %v1529_v60 = vpop.xlane.xlu0 %1528  ;;  %v1933_v33 = vsel %vm1919_vm2, %v1720_v28, %v1711_v54 }
 0x274   : > { %v1868_v52 = vrot.slane %v1529_v60, %v3687_v12 }
 0x276   : > { %v1873_v9 = vsel %vm1638_vm1, %v1872_v8, %v1868_v52  ;;  %v1436_v11 = vpop.xlane.xlu1 %1435 }
 0x277   : > { %v1948_v16 = vsel %vm1921_vm3, %v1873_v9, %v1947_v34  ;;  %v1433_v62 = vpop.xlane.xlu0 %1432  ;;  %v1728_v20 = vrot.slane %v1436_v11, %v3685_v5 }
 0x278   : > { %v1724_v47 = vrot.slane %v1433_v62, %v3687_v12 }
 0x27a   : > { %v1538_v13 = vpop.xlane.xlu1 %1537  ;;  %v1729_v49 = vsel %vm1638_vm1, %v1728_v20, %v1724_v47 }
 0x27b   : > { %v1881_v22 = vrot.slane %v1538_v13, %v3685_v5  ;;  %v1535_v39 = vpop.xlane.xlu0 %1534  ;;  %v1934_v1 = vsel %vm1921_vm3, %v1729_v49, %v1933_v33 }
 0x27c   : > { %v1877_v19 = vrot.slane %v1535_v39, %v3687_v12 }
 0x27e   : > { %v1882_v41 = vsel %vm1638_vm1, %v1881_v22, %v1877_v19  ;;  %v1442_v15 = vpop.xlane.xlu1 %1441 }
 0x27f   : > { %v1949_v23 = vsel %vm1923_vm4, %v1882_v41, %v1948_v16  ;;  %v1439_v0 = vpop.xlane.xlu0 %1438  ;;  %v1737_v40 = vrot.slane %v1442_v15, %v3685_v5  ;;  %v1965_v15 = vld [vmem:[#allocation2 + $0x10] sm:$0xff] }
 0x280   : > { %v1733_v58 = vrot.slane %v1439_v0, %v3687_v12  ;;  %v1999_v0 = vld [vmem:[%s379_s29] sm:$0xff] }
 0x281   : > { %vm2001_vm10 = vcmp.ne.s32.totalorder %v1999_v0, 0 }
 0x282   : > { %v1544_v6 = vpop.xlane.xlu1 %1543  ;;  %v1738_v55 = vsel %vm1638_vm1, %v1737_v40, %v1733_v58 }
 0x283   : > { %v1890_v18 = vrot.slane %v1544_v6, %v3685_v5  ;;  %v1541_v25 = vpop.xlane.xlu0 %1540  ;;  %v1935_v61 = vsel %vm1923_vm4, %v1738_v55, %v1934_v1 }
 0x284   : > { %v1886_v27 = vrot.slane %v1541_v25, %v3687_v12 }
 0x286   : > { %v1891_v29 = vsel %vm1638_vm1, %v1890_v18, %v1886_v27  ;;  %v1448_v46 = vpop.xlane.xlu1 %1447 }
 0x287   : > { %v1950_v10 = vsel %vm1925_vm5, %v1891_v29, %v1949_v23  ;;  %v1445_v24 = vpop.xlane.xlu0 %1444  ;;  %v1746_v3 = vrot.slane %v1448_v46, %v3685_v5 }
 0x288   : > { %v1742_v42 = vrot.slane %v1445_v24, %v3687_v12 }
 0x28a   : > { %v1550_v51 = vpop.xlane.xlu1 %1549  ;;  %v1747_v26 = vsel %vm1638_vm1, %v1746_v3, %v1742_v42 }
 0x28b   : > { %v1899_v32 = vrot.slane %v1550_v51, %v3685_v5  ;;  %v1547_v37 = vpop.xlane.xlu0 %1546  ;;  %v1936_v53 = vsel %vm1925_vm5, %v1747_v26, %v1935_v61 }
 0x28c   : > { %v1895_v38 = vrot.slane %v1547_v37, %v3687_v12 }
 0x28e   : > { %v1900_v43 = vsel %vm1638_vm1, %v1899_v32, %v1895_v38  ;;  %v1454_v48 = vpop.xlane.xlu1 %1453 }
 0x28f   : > { %v1951_v44 = vsel %vm1927_vm6, %v1900_v43, %v1950_v10  ;;  %v1755_v56 = vrot.slane %v1454_v48, %v3685_v5  ;;  %v1451_v36 = vpop.xlane.xlu0 %1450 }
 0x290   : > { %v1751_v50 = vrot.slane %v1451_v36, %v3687_v12 }
 0x292   : > { %v1460_v2 = vpop.xlane.xlu1 %1459  ;;  %v1756_v31 = vsel %vm1638_vm1, %v1755_v56, %v1751_v50 }
 0x293   : > { %v1764_v57 = vrot.slane %v1460_v2, %v3685_v5  ;;  %v1457_v59 = vpop.xlane.xlu0 %1456  ;;  %v1937_v63 = vsel %vm1927_vm6, %v1756_v31, %v1936_v53 }
 0x294   : > { %v1760_v45 = vrot.slane %v1457_v59, %v3687_v12 }
 0x296   : > { %v1765_v7 = vsel %vm1638_vm1, %v1764_v57, %v1760_v45  ;;  %v1556_v8 = vpop.xlane.xlu1 %1555 }
 0x297   : > { %v1938_v60 = vsel %vm1929_vm7, %v1765_v7, %v1937_v63  ;;  %v1908_v52 = vrot.slane %v1556_v8, %v3685_v5  ;;  %v1553_v35 = vpop.xlane.xlu0 %1552 }
 0x298   : > { %v1939_v34 = vsel %vm1931_vm8, %v3692_v4, %v1938_v60  ;;  %v1904_v9 = vrot.slane %v1553_v35, %v3687_v12 }
 0x299   : > { %1960 = vst.msk [vmem:[#allocation2 + $0x8] sm:$0xff] %vm1958_vm9, %v1939_v34 }
 0x29a   : > { %v1909_v11 = vsel %vm1638_vm1, %v1908_v52, %v1904_v9  ;;  %v1562_v16 = vpop.xlane.xlu1 %1561 }
 0x29b   : > { %v1952_v62 = vsel %vm1929_vm7, %v1909_v11, %v1951_v44  ;;  %v1917_v13 = vrot.slane %v1562_v16, %v3685_v5  ;;  %v1559_v22 = vpop.xlane.xlu0 %1558  ;;  %v2000_v5 = vld [vmem:[%s379_s29 + $0x8] sm:$0xff] }
 0x29c   : > { %v1913_v39 = vrot.slane %v1559_v22, %v3687_v12  ;;  %vm2002_vm11 = vcmp.ne.s32.totalorder %v2000_v5, 0 }
 0x29e   : > { %v1918_v19 = vsel %vm1638_vm1, %v1917_v13, %v1913_v39 }
 0x29f   : > { %v1953_v4 = vsel %vm1931_vm8, %v1918_v19, %v1952_v62 }
 0x2a0   : > { %1962 = vst.msk [vmem:[#allocation2 + $0x18] sm:$0xff] %vm1958_vm9, %v1953_v4  ;;  %v1964_v41 = vld [vmem:[#allocation2 + $0x8] sm:$0xff] }
 0x2a1   : > { %1968 = vxpose.xlu0.b32.cont [2/4] (short) (narrow) %v1964_v41, 16 }
 0x2a5   : > { %1969 = vxpose.xlu0.b32.cont [3/4] (short) (narrow) %v1965_v15, 16 }
 0x2a7   : > { %v1966_v23 = vld [vmem:[#allocation2 + $0x18] sm:$0xff] }
 0x2a9   : > { %1970 = vxpose.xlu0.b32.end [4/4] (short) (narrow) %v1966_v23, 16 }
 0x31d   : > { %v1983_v6 = vpop.trf.xlu0 }
 0x31e   : > { %v2003_v18 = vsel %vm2001_vm10, %v1983_v6, -1e+10 }
 0x31f   : > { %v2005_v12 = vsel %vm445_vm0, %v2003_v18, -inf }
 0x320   : > { %2006 = vmax.xlane.f32.xlu1 %v2005_v12 }
 0x321   : > { %v1984_v25 = vpop.trf.xlu0 }
 0x322   : > { %v2004_v27 = vsel %vm2002_vm11, %v1984_v25, -1e+10 }
 0x323   : > { %v2008_v29 = vsel %vm445_vm0, %v2004_v27, -inf }
 0x324   : > { %2009 = vmax.xlane.f32.xlu1 %v2008_v29 }
 0x3ad   : > { %v2007_v46 = vpop.xlane.xlu1 %2006 }
 0x3ae   : > { %v2011_v10 = vsub.f32 %v2003_v18, %v2007_v46 }
 0x3b0   : > { %v2013_v24 = vmul.f32 1.442695, %v2011_v10 }
 0x3b1   : > { %v2010_v51 = vpop.xlane.xlu1 %2009 }
 0x3b2   : > { %2701 = vpow2.f32 %v2013_v24  ;;  %v2012_v30 = vsub.f32 %v2004_v27, %v2010_v51 }
 0x3b4   : > { %v2015_v17 = vmul.f32 1.442695, %v2012_v30 }
 0x3b6   : > { %2703 = vpow2.f32 %v2015_v17 }
 0x3bc   : > { %v2702_v32 = vpop.eup %2701 }
 0x3bd   : > { %v2017_v37 = vsel %vm445_vm0, %v2702_v32, 0.0 }
 0x3be   : > { %2018 = vadd.xlane.f32.xlu1 %v2017_v37 }
 0x3c0   : > { %v2704_v20 = vpop.eup %2703 }
 0x3c1   : > { %v2020_v47 = vsel %vm445_vm0, %v2704_v20, 0.0 }
 0x3c2   : > { %2021 = vadd.xlane.f32.xlu1 %v2020_v47 }
 0x44b   : > { %v2019_v38 = vpop.xlane.xlu1 %2018 }
 0x44c   : > { %2705 = vrcp.f32 %v2019_v38 }
 0x44f   : > { %v2022_v14 = vpop.xlane.xlu1 %2021 }
 0x450   : > { %2707 = vrcp.f32 %v2022_v14 }
 0x456   : > { %v2706_v21 = vpop.eup %2705 }
 0x457   : > { %v2025_v40 = vmul.f32 %v2706_v21, %v2702_v32 }
 0x459   : > { %2027 = vst.msk [vmem:[%s427_s16] sm:$0xff] %vm445_vm0, %v2025_v40 }
 0x45a   : > { %v2708_v58 = vpop.eup %2707 }
 0x45b   : > { %v2026_v3 = vmul.f32 %v2708_v58, %v2704_v20 }
 0x45d   : > { %2028 = vst.msk [vmem:[%s427_s16 + $0x8] sm:$0xff] %vm445_vm0, %v2026_v3 }
 0x45e   : > { %2834 = shalt.err (!%p2831_p7)
}
 0x45f   : > { %s2835_s9 = scalar_lea.hbm %s3861_s11, 256  ;;  %s2839_s12 = scalar_lea.hbm %s3915_s7, 512 }
 0x460   : > { %p2836_p8 = scmp.ne.s32.totalorder %s3861_s11, %s2835_s9  ;;  %p2840_p3 = scmp.lt.u32.totalorder %s3861_s11, %s3915_s7 }
 0x461   : > { %p2841_p10 = scmp.lt.u32.totalorder %s2839_s12, %s2835_s9  ;;  %p2843_p5 = scmp.lt.u32.totalorder %s2835_s9, %s3861_s11 }
 0x462   : > { %p2837_p0 = pnand %p2836_p8, %p3946_p2 }
 0x463   : > { %p2842_p1 = por %p2841_p10, %p2840_p3 }
 0x464   : > { %p2838_p9 = pneg %p2837_p0 }
 0x465   : > { %p2844_p11 = por %p2843_p5, %p2842_p1 }
 0x467   : > { %p2845_p12 = pnand %p2844_p11, %p2838_p9 }
 0x469   : > { %2848 = shalt.err (!%p2845_p12)
}
 0x46a   : > { %s2912_s14 = smov 128   ;;  %s2913_s17 = smov 8  }
 0x46b   : > { %2508 = dma.vmem_to_hbm [thread:$0]  (%p3946_p2), %s3863_s30, 256, %s3861_s11, %s2030_s20, %s2912_s14, %s2912_s14, %s2913_s17  }
 0x46c PF: > { %s3947_s16 = sld [smem:[#allocation22_spill]]  ;;  %s2058_s0 = sand.u32 1, %s2883_s24  }
 0x46d   : > { %s2059_s22 = scalar_lea.sflag [#allocation5], %s2058_s0 }
 0x472   : > { %p3948_p6 = scmp.ne.s32.totalorder %s3947_s16, 0 }
 0x474   : > { %p2518_p13 = pnand %p2182_p4, %p3948_p6 }
 0x476   : > { %2878 = dma.done.wait (!%p2518_p13), %s2059_s22, 256  }
 0x477   : > { %2880 = vsyncadd (!%p2518_p13), %s2059_s22, 4294967040  ;;  %s3949_s27 = sld [smem:[#allocation20_spill]]  ;;  %s3950_s28 = sld [smem:[#allocation21_spill]] }
 0x478   : > { %s3951_s24 = smov %s2887_s25  ;;  %s3952_s25 = smov %s2891_s26 }
 0x47d   : > { %p24_p7 = scmp.ge.s32.totalorder %s3949_s27, 4   ;;  %s3953_s26 = smov %s3950_s28 }
 0x47f   :  { %26 = sbr.rel (!%p24_p7) target bundleno = 10 (0xa), region = 130 }
 0x486   :  { %2064 = vsyncpa [#allocation4], 1 }
 0x487   :  { %2066 = vsyncpa [#allocation4 + $0x1], 1 }
 0x488   :  { %2067 = vsyncpa [#allocation7], 1 }
 0x489   :  { %2069 = vsyncpa [#allocation7 + $0x1], 1 }
 0x48a   :  { %2070 = vsyncpa [#allocation10], 1 }
 0x48b   :  { %2071 = vsyncpa [#allocation5], 1 }
 0x48c   :  { %2073 = vsyncpa [#allocation5 + $0x1], 1 }

</bundles_post_ra>
